<compile_context>
chip_gen: v7x
topology: tpu7x:2x2x1
jax: 0.10.0
libtpu: 0.0.40
codegen_flags: <defaults>
</compile_context>

<pallas_src>
import functools

import jax
import jax.numpy as jnp
from jax.experimental import pallas as pl
from jax.experimental.pallas import tpu as pltpu

NUM_TASKS = 3   # len(paramslist): pretrained checkpoint + 2 task vectors
PRIOR = 0.3     # config.prior used to initialize lambdas_raw
LANE = 128      # lane width  (last-dim alignment of weight matrices)
SUBLANE = 8     # sublane width (batch-tile alignment)


# ---------------------------------------------------------------------------
# small padding helpers (zero padding preserves the math exactly; used once
# at __init__ -- the hot path never pads)
# ---------------------------------------------------------------------------
def _round_up(n, m):
    return ((n + m - 1) // m) * m


def _pad2(a, rows, cols):
    return jnp.pad(a, ((0, rows - a.shape[0]), (0, cols - a.shape[1])))


def _pad3(a, rows, cols):
    return jnp.pad(a, ((0, 0), (0, rows - a.shape[1]), (0, cols - a.shape[2])))


# ---------------------------------------------------------------------------
# Fused Pallas kernel: (hoisted) merge -> MLP (ReLU) -> feature -> classifier
# ---------------------------------------------------------------------------
def _fused_adamerging_kernel(lam_ref,                       # SMEM (4, K)
                             w1s_ref, b1s_ref,              # VMEM (K, Din, Hp), (K, 1, Hp)
                             w2s_ref, b2s_ref,              # VMEM (K, Hp, Dfp), (K, 1, Dfp)
                             cw_ref, cb_ref,                # VMEM (Dfp, Cp), (1, Cp)
                             x_ref,                         # VMEM (tb, Din)
                             out_ref, feat_ref,             # VMEM (tb, Cp), (tb, Dfp)
                             w1m_ref, b1m_ref,              # scratch: merged W1 / b1
                             w2m_ref, b2m_ref,              # scratch: merged W2 / b2
                             *, num_tasks, matmul_dtype):
    # ---- hoisted layerwise weighted merge: once per core (inner axis == 0),
    # ---- result persists in VMEM scratch across all batch tiles of this core.
    @pl.when(pl.program_id(1) == 0)
    def _merge():
        w1 = lam_ref[0, 0] * w1s_ref[0]
        b1 = lam_ref[1, 0] * b1s_ref[0]
        w2 = lam_ref[2, 0] * w2s_ref[0]
        b2 = lam_ref[3, 0] * b2s_ref[0]
        for k in range(1, num_tasks):                  # tiny static K loop
            w1 = w1 + lam_ref[0, k] * w1s_ref[k]
            b1 = b1 + lam_ref[1, k] * b1s_ref[k]
            w2 = w2 + lam_ref[2, k] * w2s_ref[k]
            b2 = b2 + lam_ref[3, k] * b2s_ref[k]
        w1m_ref[...] = w1.astype(matmul_dtype)          # MXU operand dtype
        b1m_ref[...] = b1                               # biases stay f32 (VPU add)
        w2m_ref[...] = w2.astype(matmul_dtype)
        b2m_ref[...] = b2

    # ---- merged "encoder" forward + classifier head, all in VMEM ----------
    x = x_ref[...].astype(matmul_dtype)
    h = jnp.dot(x, w1m_ref[...], preferred_element_type=jnp.float32) + b1m_ref[...]
    h = jnp.maximum(h, 0.0)
    feat = (jnp.dot(h.astype(matmul_dtype), w2m_ref[...],
                    preferred_element_type=jnp.float32) + b2m_ref[...])
    feat_ref[...] = feat
    out_ref[...] = (jnp.dot(feat.astype(matmul_dtype), cw_ref[...],
                            preferred_element_type=jnp.float32) + cb_ref[...])


def _fused_forward(lam, w1s, b1s, w2s, b2s, cw, cb, x, tb, matmul_dtype):
    """Weights pre-padded/stacked at init; x is the raw (B, Din) activation."""
    K, Din, H_p = w1s.shape
    Dfeat_p = w2s.shape[2]
    C_p = cw.shape[1]
    B = x.shape[0]

    n_tiles = pl.cdiv(B, tb)
    # Outer "core split" axis so the hoisted merge runs once per TensorCore on
    # v7x (megacore); harmless (sequential) on v5e/v6e.
    n_split = 2 if (n_tiles >= 2 and n_tiles % 2 == 0) else 1
    tiles_per_split = n_tiles // n_split
    grid = (n_split, tiles_per_split)

    def batch_map(i, j):
        return (i * tiles_per_split + j, 0)

    mm_bytes = jnp.dtype(matmul_dtype).itemsize

    # ---- advisory cost estimate: one merge per core-split + per-row matmuls
    flops = (2 * B * (Din * H_p + H_p * Dfeat_p + Dfeat_p * C_p)
             + 2 * K * n_split * (Din * H_p + H_p + H_p * Dfeat_p + Dfeat_p))
    bytes_accessed = (4 * (lam.size + w1s.size + b1s.size + w2s.size + b2s.size)
                      + mm_bytes * cw.size + 4 * cb.size
                      + 4 * x.size + 4 * B * (C_p + Dfeat_p))

    # ---- explicit VMEM budget: resident stacks (double-buffered) + merged
    # scratch + activation/output tiles, with headroom; clamped for v7x (64MiB)
    resident = (2 * 4 * (w1s.size + b1s.size + w2s.size + b2s.size)
                + mm_bytes * (Din * H_p + H_p * Dfeat_p) + 4 * (H_p + Dfeat_p)
                + 2 * (mm_bytes * cw.size + 4 * cb.size)
                + 2 * 4 * tb * Din
                + 2 * 4 * tb * (C_p + Dfeat_p))
    vmem_limit = min(max(int(1.5 * resident) + (4 << 20), 32 << 20), 60 << 20)

    return pl.pallas_call(
        functools.partial(_fused_adamerging_kernel,
                          num_tasks=K, matmul_dtype=matmul_dtype),
        out_shape=(jax.ShapeDtypeStruct((B, C_p), jnp.float32),
                   jax.ShapeDtypeStruct((B, Dfeat_p), jnp.float32)),
        grid=grid,
        in_specs=[
            pl.BlockSpec(memory_space=pltpu.MemorySpace.SMEM),        # lambdas (4, K)
            pl.BlockSpec((K, Din, H_p), lambda i, j: (0, 0, 0)),      # W1 stack
            pl.BlockSpec((K, 1, H_p), lambda i, j: (0, 0, 0)),        # b1 stack
            pl.BlockSpec((K, H_p, Dfeat_p), lambda i, j: (0, 0, 0)),  # W2 stack
            pl.BlockSpec((K, 1, Dfeat_p), lambda i, j: (0, 0, 0)),    # b2 stack
            pl.BlockSpec((Dfeat_p, C_p), lambda i, j: (0, 0)),        # classifier W
            pl.BlockSpec((1, C_p), lambda i, j: (0, 0)),              # classifier b
            pl.BlockSpec((tb, Din), batch_map),                       # x batch tile
        ],
        out_specs=(pl.BlockSpec((tb, C_p), batch_map),                # out
                   pl.BlockSpec((tb, Dfeat_p), batch_map)),           # feature
        scratch_shapes=[
            pltpu.VMEM((Din, H_p), matmul_dtype),       # merged W1
            pltpu.VMEM((1, H_p), jnp.float32),          # merged b1
            pltpu.VMEM((H_p, Dfeat_p), matmul_dtype),   # merged W2
            pltpu.VMEM((1, Dfeat_p), jnp.float32),      # merged b2
        ],
        compiler_params=pltpu.CompilerParams(
            dimension_semantics=("parallel", "arbitrary"),
            vmem_limit_bytes=vmem_limit),
        cost_estimate=pl.CostEstimate(
            flops=int(flops), transcendentals=0,
            bytes_accessed=int(bytes_accessed)),
    )(lam, w1s, b1s, w2s, b2s, cw, cb, x)


# ---------------------------------------------------------------------------
# AdaMerging (JAX / Pallas version)
# ---------------------------------------------------------------------------
class AdaMergingPallas:
    """config.layerwise == True path of the PyTorch AdaMerging module.

    The merged "image encoder" here is a 2-layer MLP whose 4 parameters
    (W1, b1, W2, b2) are stored per-task in `paramslist`, preserving the
    lambda-merge + forward + per-dataset-head semantics of the original.
    """

    def __init__(self, paramslist, classifiers, prior=PRIOR,
                 matmul_dtype=jnp.bfloat16):
        # paramslist: tuple of K tuples, each with 4 parameter tensors:
        #   W1 (Din, H), b1 (1, H), W2 (H, Dfeat), b2 (1, Dfeat)
        self.paramslist = paramslist          # kept (unpadded) for reference
        self.K = len(paramslist)
        self.L = len(paramslist[0])
        assert self.L == 4, "toy encoder has exactly 4 merged parameters"
        self.matmul_dtype = matmul_dtype

        # lambdas (config.layerwise == True)
        self.pretrain_lambdas = jnp.ones((self.L, 1), jnp.float32)
        self.lambdas_raw = jnp.ones((self.L, self.K - 1), jnp.float32) * prior

        # ---- pre-stack per-task params ONCE; zero-pad only the lane (output)
        # dims to multiples of 128.  Din stays unpadded (it is the full dim of
        # its axis in every BlockSpec), so activations never need padding.
        w1s = jnp.stack([paramslist[k][0] for k in range(self.K)], axis=0)
        b1s = jnp.stack([paramslist[k][1] for k in range(self.K)], axis=0)
        w2s = jnp.stack([paramslist[k][2] for k in range(self.K)], axis=0)
        b2s = jnp.stack([paramslist[k][3] for k in range(self.K)], axis=0)
        self.Din, self.H = int(w1s.shape[1]), int(w1s.shape[2])
        self.Dfeat = int(w2s.shape[2])
        self.H_p = _round_up(self.H, LANE)
        self.Dfeat_p = _round_up(self.Dfeat, LANE)
        self.w1s = _pad3(w1s, self.Din, self.H_p)
        self.b1s = _pad3(b1s, 1, self.H_p)
        self.w2s = _pad3(w2s, self.H_p, self.Dfeat_p)
        self.b2s = _pad3(b2s, 1, self.Dfeat_p)

        # ---- per-dataset classification heads, padded + cast once
        # classifiers: dict name -> (W (Dfeat, C), b (C,))   [x @ W + b]
        self.classifiers = {}
        for name, (cw, cb) in classifiers.items():
            C = int(cw.shape[1])
            C_p = _round_up(C, LANE)
            self.classifiers[name] = (
                _pad2(cw, self.Dfeat_p, C_p).astype(matmul_dtype),
                _pad2(cb.reshape(1, -1), 1, C_p).astype(jnp.float32),
                C,
            )

    def lambdas(self):
        task_lambdas = jnp.clip(self.lambdas_raw, 0.0, 1.0)
        return jnp.concatenate([self.pretrain_lambdas, task_lambdas], axis=1)  # (L, K)

    def forward(self, inp, dataset_name, tb=256):
        lam = self.lambdas()                               # (4, K) -> SMEM
        cw_p, cb_p, C = self.classifiers[dataset_name]
        B = int(inp.shape[0])
        tb = _round_up(min(int(tb), _round_up(B, SUBLANE)), SUBLANE)
        out_p, feat_p = _fused_forward(
            lam, self.w1s, self.b1s, self.w2s, self.b2s, cw_p, cb_p,
            inp, tb, self.matmul_dtype)
        return out_p[:, :C], feat_p[:, :self.Dfeat]


# ---------------------------------------------------------------------------
# Reference (pure jnp, unpadded) for correctness check
# ---------------------------------------------------------------------------
def reference_forward(model, x, cw, cb):
    lam = jnp.concatenate(
        [model.pretrain_lambdas, jnp.clip(model.lambdas_raw, 0.0, 1.0)], axis=1)
    merged = []
    for j in range(model.L):
        s = jnp.stack([model.paramslist[k][j] for k in range(model.K)], axis=0)
        merged.append(jnp.sum(lam[j][:, None, None] * s, axis=0))
    w1, b1, w2, b2 = merged
    h = jnp.maximum(x @ w1 + b1.reshape(-1), 0.0)
    feature = h @ w2 + b2.reshape(-1)
    out = feature @ cw + cb
    return out, feature


# ---------------------------------------------------------------------------
if __name__ == "__main__":
    B, Din, H, Dfeat, C = 64, 96, 160, 112, 40

    key = jax.random.PRNGKey(0)
    keys = jax.random.split(key, NUM_TASKS * 4 + 3)

    def mk(k, shape, scale=0.05):
        return (jax.random.normal(k, shape, jnp.float32) * scale).astype(jnp.float32)

    # One MLP "model": W1 (Din,H), b1 (1,H), W2 (H,Dfeat), b2 (1,Dfeat)
    param_shapes = [(Din, H), (1, H), (H, Dfeat), (1, Dfeat)]
    paramslist = []
    ki = 0
    for _t in range(NUM_TASKS):
        ps = []
        for s in param_shapes:
            ps.append(mk(keys[ki], s))
            ki += 1
        paramslist.append(tuple(ps))
    paramslist = tuple(paramslist)

    # classification head for one dataset (PyTorch Linear(Dfeat -> C): transpose W)
    clf_w_torch = mk(keys[ki], (C, Dfeat)); ki += 1
    clf_b = mk(keys[ki], (C,)); ki += 1
    clf_w = clf_w_torch.T                      # (Dfeat, C) for x @ W + b
    classifiers = {"dataset0": (clf_w, clf_b)}

    x = jax.random.normal(keys[ki], (B, Din), jnp.float32); ki += 1

    model_f32 = AdaMergingPallas(paramslist, classifiers, matmul_dtype=jnp.float32)
    model_bf16 = AdaMergingPallas(paramslist, classifiers, matmul_dtype=jnp.bfloat16)

    ref_out, ref_feature = reference_forward(model_f32, x, clf_w, clf_b)

    # 1) f32 matmuls, multi-tile 2-D grid (exercises the hoisted merge + split)
    out1, feat1 = model_f32.forward(x, "dataset0", tb=16)
    out1 = jax.block_until_ready(out1); feat1 = jax.block_until_ready(feat1)
    assert out1.shape == (B, C) and feat1.shape == (B, Dfeat)
    assert jnp.allclose(out1, ref_out, atol=5e-3, rtol=5e-3)
    assert jnp.allclose(feat1, ref_feature, atol=5e-3, rtol=5e-3)

    # 2) f32 matmuls, default large tile (single batch tile), ragged tile cover
    out2, feat2 = model_f32.forward(x, "dataset0")          # tb clamps to 64
    out3, feat3 = model_f32.forward(x, "dataset0", tb=24)   # cdiv grid, masked tail
    out2 = jax.block_until_ready(out2); out3 = jax.block_until_ready(out3)
    assert jnp.allclose(out2, ref_out, atol=5e-3, rtol=5e-3)
    assert jnp.allclose(feat2, ref_feature, atol=5e-3, rtol=5e-3)
    assert jnp.allclose(out3, ref_out, atol=5e-3, rtol=5e-3)
    assert jnp.allclose(feat3, ref_feature, atol=5e-3, rtol=5e-3)

    # 3) bf16 MXU operands (f32 accumulation) -- looser tolerance
    out4, feat4 = model_bf16.forward(x, "dataset0", tb=16)
    out4 = jax.block_until_ready(out4); feat4 = jax.block_until_ready(feat4)
    assert jnp.allclose(out4, ref_out, atol=5e-2, rtol=5e-2)
    assert jnp.allclose(feat4, ref_feature, atol=5e-2, rtol=5e-2)

    print("KERNEL_OK")
</pallas_src>

<mosaic_0001>
module attributes {stable_mosaic.version = 11 : i64} {
  func.func @_fused_adamerging_kernel(%arg0: i32, %arg1: i32, %arg2: memref<4x3xf32, #tpu.memory_space<smem>>, %arg3: memref<3x96x256xf32, #tpu.memory_space<vmem>>, %arg4: memref<3x1x256xf32, #tpu.memory_space<vmem>>, %arg5: memref<3x256x128xf32, #tpu.memory_space<vmem>>, %arg6: memref<3x1x128xf32, #tpu.memory_space<vmem>>, %arg7: memref<128x128xf32, #tpu.memory_space<vmem>>, %arg8: memref<1x128xf32, #tpu.memory_space<vmem>>, %arg9: memref<16x96xf32, #tpu.memory_space<vmem>>, %arg10: memref<16x128xf32, #tpu.memory_space<vmem>>, %arg11: memref<16x128xf32, #tpu.memory_space<vmem>>, %arg12: memref<96x256xf32, #tpu.memory_space<vmem>>, %arg13: memref<1x256xf32, #tpu.memory_space<vmem>>, %arg14: memref<256x128xf32, #tpu.memory_space<vmem>>, %arg15: memref<1x128xf32, #tpu.memory_space<vmem>>) attributes {dimension_semantics = [#tpu.dimension_semantics<parallel>, #tpu.dimension_semantics<arbitrary>], iteration_bounds = array<i64: 2, 2>, scalar_prefetch = 0 : i64, scratch_operands = 4 : i64, tpu.core_type = #tpu.core_type<tc>, window_params = [{transform_indices = @transform_0, window_bounds = array<i64: 4, 3>}, {pipeline_mode = #tpu.pipeline_mode<synchronous>, transform_indices = @transform_1, window_bounds = array<i64: 3, 96, 256>}, {pipeline_mode = #tpu.pipeline_mode<synchronous>, transform_indices = @transform_2, window_bounds = array<i64: 3, 1, 256>}, {pipeline_mode = #tpu.pipeline_mode<synchronous>, transform_indices = @transform_3, window_bounds = array<i64: 3, 256, 128>}, {pipeline_mode = #tpu.pipeline_mode<synchronous>, transform_indices = @transform_4, window_bounds = array<i64: 3, 1, 128>}, {pipeline_mode = #tpu.pipeline_mode<synchronous>, transform_indices = @transform_5, window_bounds = array<i64: 128, 128>}, {pipeline_mode = #tpu.pipeline_mode<synchronous>, transform_indices = @transform_6, window_bounds = array<i64: 1, 128>}, {transform_indices = @transform_7, window_bounds = array<i64: 16, 96>}, {transform_indices = @transform_8, window_bounds = array<i64: 16, 128>}, {transform_indices = @transform_9, window_bounds = array<i64: 16, 128>}]} {
    %c0_i32 = arith.constant 0 : i32
    %0 = arith.cmpi eq, %arg1, %c0_i32 : i32
    %1 = arith.extui %0 : i1 to i32
    %c0_i32_0 = arith.constant 0 : i32
    %2 = arith.cmpi ne, %1, %c0_i32_0 : i32
    scf.if %2 {
      %c0_21 = arith.constant 0 : index
      %c0_22 = arith.constant 0 : index
      %23 = memref.load %arg2[%c0_21, %c0_22] : memref<4x3xf32, #tpu.memory_space<smem>>
      %c0_23 = arith.constant 0 : index
      %c0_24 = arith.constant 0 : index
      %c0_25 = arith.constant 0 : index
      %24 = vector.load %arg3[%c0_23, %c0_24, %c0_25] : memref<3x96x256xf32, #tpu.memory_space<vmem>>, vector<1x96x256xf32>
      %25 = vector.shape_cast %24 : vector<1x96x256xf32> to vector<96x256xf32>
      %26 = vector.broadcast %23 : f32 to vector<96x256xf32>
      %27 = arith.mulf %26, %25 : vector<96x256xf32>
      %c1 = arith.constant 1 : index
      %c0_26 = arith.constant 0 : index
      %28 = memref.load %arg2[%c1, %c0_26] : memref<4x3xf32, #tpu.memory_space<smem>>
      %c0_27 = arith.constant 0 : index
      %c0_28 = arith.constant 0 : index
      %c0_29 = arith.constant 0 : index
      %29 = vector.load %arg4[%c0_27, %c0_28, %c0_29] : memref<3x1x256xf32, #tpu.memory_space<vmem>>, vector<1x1x256xf32>
      %30 = vector.shape_cast %29 : vector<1x1x256xf32> to vector<1x256xf32>
      %31 = vector.broadcast %28 : f32 to vector<1x256xf32>
      %32 = arith.mulf %31, %30 : vector<1x256xf32>
      %c2 = arith.constant 2 : index
      %c0_30 = arith.constant 0 : index
      %33 = memref.load %arg2[%c2, %c0_30] : memref<4x3xf32, #tpu.memory_space<smem>>
      %c0_31 = arith.constant 0 : index
      %c0_32 = arith.constant 0 : index
      %c0_33 = arith.constant 0 : index
      %34 = vector.load %arg5[%c0_31, %c0_32, %c0_33] : memref<3x256x128xf32, #tpu.memory_space<vmem>>, vector<1x256x128xf32>
      %35 = vector.shape_cast %34 : vector<1x256x128xf32> to vector<256x128xf32>
      %36 = vector.broadcast %33 : f32 to vector<256x128xf32>
      %37 = arith.mulf %36, %35 : vector<256x128xf32>
      %c3 = arith.constant 3 : index
      %c0_34 = arith.constant 0 : index
      %38 = memref.load %arg2[%c3, %c0_34] : memref<4x3xf32, #tpu.memory_space<smem>>
      %c0_35 = arith.constant 0 : index
      %c0_36 = arith.constant 0 : index
      %c0_37 = arith.constant 0 : index
      %39 = vector.load %arg6[%c0_35, %c0_36, %c0_37] : memref<3x1x128xf32, #tpu.memory_space<vmem>>, vector<1x1x128xf32>
      %40 = vector.shape_cast %39 : vector<1x1x128xf32> to vector<1x128xf32>
      %41 = vector.broadcast %38 : f32 to vector<1x128xf32>
      %42 = arith.mulf %41, %40 : vector<1x128xf32>
      %c0_38 = arith.constant 0 : index
      %c1_39 = arith.constant 1 : index
      %43 = memref.load %arg2[%c0_38, %c1_39] : memref<4x3xf32, #tpu.memory_space<smem>>
      %c1_40 = arith.constant 1 : index
      %c0_41 = arith.constant 0 : index
      %c0_42 = arith.constant 0 : index
      %44 = vector.load %arg3[%c1_40, %c0_41, %c0_42] : memref<3x96x256xf32, #tpu.memory_space<vmem>>, vector<1x96x256xf32>
      %45 = vector.shape_cast %44 : vector<1x96x256xf32> to vector<96x256xf32>
      %46 = vector.broadcast %43 : f32 to vector<96x256xf32>
      %47 = arith.mulf %46, %45 : vector<96x256xf32>
      %48 = arith.addf %27, %47 : vector<96x256xf32>
      %c1_43 = arith.constant 1 : index
      %c1_44 = arith.constant 1 : index
      %49 = memref.load %arg2[%c1_43, %c1_44] : memref<4x3xf32, #tpu.memory_space<smem>>
      %c1_45 = arith.constant 1 : index
      %c0_46 = arith.constant 0 : index
      %c0_47 = arith.constant 0 : index
      %50 = vector.load %arg4[%c1_45, %c0_46, %c0_47] : memref<3x1x256xf32, #tpu.memory_space<vmem>>, vector<1x1x256xf32>
      %51 = vector.shape_cast %50 : vector<1x1x256xf32> to vector<1x256xf32>
      %52 = vector.broadcast %49 : f32 to vector<1x256xf32>
      %53 = arith.mulf %52, %51 : vector<1x256xf32>
      %54 = arith.addf %32, %53 : vector<1x256xf32>
      %c2_48 = arith.constant 2 : index
      %c1_49 = arith.constant 1 : index
      %55 = memref.load %arg2[%c2_48, %c1_49] : memref<4x3xf32, #tpu.memory_space<smem>>
      %c1_50 = arith.constant 1 : index
      %c0_51 = arith.constant 0 : index
      %c0_52 = arith.constant 0 : index
      %56 = vector.load %arg5[%c1_50, %c0_51, %c0_52] : memref<3x256x128xf32, #tpu.memory_space<vmem>>, vector<1x256x128xf32>
      %57 = vector.shape_cast %56 : vector<1x256x128xf32> to vector<256x128xf32>
      %58 = vector.broadcast %55 : f32 to vector<256x128xf32>
      %59 = arith.mulf %58, %57 : vector<256x128xf32>
      %60 = arith.addf %37, %59 : vector<256x128xf32>
      %c3_53 = arith.constant 3 : index
      %c1_54 = arith.constant 1 : index
      %61 = memref.load %arg2[%c3_53, %c1_54] : memref<4x3xf32, #tpu.memory_space<smem>>
      %c1_55 = arith.constant 1 : index
      %c0_56 = arith.constant 0 : index
      %c0_57 = arith.constant 0 : index
      %62 = vector.load %arg6[%c1_55, %c0_56, %c0_57] : memref<3x1x128xf32, #tpu.memory_space<vmem>>, vector<1x1x128xf32>
      %63 = vector.shape_cast %62 : vector<1x1x128xf32> to vector<1x128xf32>
      %64 = vector.broadcast %61 : f32 to vector<1x128xf32>
      %65 = arith.mulf %64, %63 : vector<1x128xf32>
      %66 = arith.addf %42, %65 : vector<1x128xf32>
      %c0_58 = arith.constant 0 : index
      %c2_59 = arith.constant 2 : index
      %67 = memref.load %arg2[%c0_58, %c2_59] : memref<4x3xf32, #tpu.memory_space<smem>>
      %c2_60 = arith.constant 2 : index
      %c0_61 = arith.constant 0 : index
      %c0_62 = arith.constant 0 : index
      %68 = vector.load %arg3[%c2_60, %c0_61, %c0_62] : memref<3x96x256xf32, #tpu.memory_space<vmem>>, vector<1x96x256xf32>
      %69 = vector.shape_cast %68 : vector<1x96x256xf32> to vector<96x256xf32>
      %70 = vector.broadcast %67 : f32 to vector<96x256xf32>
      %71 = arith.mulf %70, %69 : vector<96x256xf32>
      %72 = arith.addf %48, %71 : vector<96x256xf32>
      %c1_63 = arith.constant 1 : index
      %c2_64 = arith.constant 2 : index
      %73 = memref.load %arg2[%c1_63, %c2_64] : memref<4x3xf32, #tpu.memory_space<smem>>
      %c2_65 = arith.constant 2 : index
      %c0_66 = arith.constant 0 : index
      %c0_67 = arith.constant 0 : index
      %74 = vector.load %arg4[%c2_65, %c0_66, %c0_67] : memref<3x1x256xf32, #tpu.memory_space<vmem>>, vector<1x1x256xf32>
      %75 = vector.shape_cast %74 : vector<1x1x256xf32> to vector<1x256xf32>
      %76 = vector.broadcast %73 : f32 to vector<1x256xf32>
      %77 = arith.mulf %76, %75 : vector<1x256xf32>
      %78 = arith.addf %54, %77 : vector<1x256xf32>
      %c2_68 = arith.constant 2 : index
      %c2_69 = arith.constant 2 : index
      %79 = memref.load %arg2[%c2_68, %c2_69] : memref<4x3xf32, #tpu.memory_space<smem>>
      %c2_70 = arith.constant 2 : index
      %c0_71 = arith.constant 0 : index
      %c0_72 = arith.constant 0 : index
      %80 = vector.load %arg5[%c2_70, %c0_71, %c0_72] : memref<3x256x128xf32, #tpu.memory_space<vmem>>, vector<1x256x128xf32>
      %81 = vector.shape_cast %80 : vector<1x256x128xf32> to vector<256x128xf32>
      %82 = vector.broadcast %79 : f32 to vector<256x128xf32>
      %83 = arith.mulf %82, %81 : vector<256x128xf32>
      %84 = arith.addf %60, %83 : vector<256x128xf32>
      %c3_73 = arith.constant 3 : index
      %c2_74 = arith.constant 2 : index
      %85 = memref.load %arg2[%c3_73, %c2_74] : memref<4x3xf32, #tpu.memory_space<smem>>
      %c2_75 = arith.constant 2 : index
      %c0_76 = arith.constant 0 : index
      %c0_77 = arith.constant 0 : index
      %86 = vector.load %arg6[%c2_75, %c0_76, %c0_77] : memref<3x1x128xf32, #tpu.memory_space<vmem>>, vector<1x1x128xf32>
      %87 = vector.shape_cast %86 : vector<1x1x128xf32> to vector<1x128xf32>
      %88 = vector.broadcast %85 : f32 to vector<1x128xf32>
      %89 = arith.mulf %88, %87 : vector<1x128xf32>
      %90 = arith.addf %66, %89 : vector<1x128xf32>
      %c0_78 = arith.constant 0 : index
      %c0_79 = arith.constant 0 : index
      %91 = vector.load %arg12[%c0_78, %c0_79] : memref<96x256xf32, #tpu.memory_space<vmem>>, vector<96x256xf32>
      tpu.vector_store %arg12[%c0_78, %c0_79], %72 {strides = array<i32>} : memref<96x256xf32, #tpu.memory_space<vmem>>, vector<96x256xf32>,
      %c0_80 = arith.constant 0 : index
      %c0_81 = arith.constant 0 : index
      %92 = vector.load %arg13[%c0_80, %c0_81] : memref<1x256xf32, #tpu.memory_space<vmem>>, vector<1x256xf32>
      tpu.vector_store %arg13[%c0_80, %c0_81], %78 {strides = array<i32>} : memref<1x256xf32, #tpu.memory_space<vmem>>, vector<1x256xf32>,
      %c0_82 = arith.constant 0 : index
      %c0_83 = arith.constant 0 : index
      %93 = vector.load %arg14[%c0_82, %c0_83] : memref<256x128xf32, #tpu.memory_space<vmem>>, vector<256x128xf32>
      tpu.vector_store %arg14[%c0_82, %c0_83], %84 {strides = array<i32>} : memref<256x128xf32, #tpu.memory_space<vmem>>, vector<256x128xf32>,
      %c0_84 = arith.constant 0 : index
      %c0_85 = arith.constant 0 : index
      %94 = vector.load %arg15[%c0_84, %c0_85] : memref<1x128xf32, #tpu.memory_space<vmem>>, vector<1x128xf32>
      tpu.vector_store %arg15[%c0_84, %c0_85], %90 {strides = array<i32>} : memref<1x128xf32, #tpu.memory_space<vmem>>, vector<1x128xf32>,
    } else {
    }
    %c0 = arith.constant 0 : index
    %c0_1 = arith.constant 0 : index
    %3 = vector.load %arg9[%c0, %c0_1] : memref<16x96xf32, #tpu.memory_space<vmem>>, vector<16x96xf32>
    %c0_2 = arith.constant 0 : index
    %c0_3 = arith.constant 0 : index
    %4 = vector.load %arg12[%c0_2, %c0_3] : memref<96x256xf32, #tpu.memory_space<vmem>>, vector<96x256xf32>
    %cst = arith.constant dense<0.000000e+00> : vector<16x256xf32>
    %5 = tpu.matmul %3, %4, %cst {dimension_numbers = #tpu.dot_dimension_numbers<[1], [0], [0], [1], [0, 0, 1, 1], [], []>} : vector<16x96xf32>, vector<96x256xf32>, vector<16x256xf32> -> vector<16x256xf32>
    %c0_4 = arith.constant 0 : index
    %c0_5 = arith.constant 0 : index
    %6 = vector.load %arg13[%c0_4, %c0_5] : memref<1x256xf32, #tpu.memory_space<vmem>>, vector<1x256xf32>
    %7 = vector.broadcast %6 : vector<1x256xf32> to vector<16x256xf32>
    %8 = arith.addf %5, %7 : vector<16x256xf32>
    %cst_6 = arith.constant 0.000000e+00 : f32
    %9 = vector.broadcast %cst_6 : f32 to vector<16x256xf32>
    %10 = arith.maximumf %8, %9 : vector<16x256xf32>
    %c0_7 = arith.constant 0 : index
    %c0_8 = arith.constant 0 : index
    %11 = vector.load %arg14[%c0_7, %c0_8] : memref<256x128xf32, #tpu.memory_space<vmem>>, vector<256x128xf32>
    %cst_9 = arith.constant dense<0.000000e+00> : vector<16x128xf32>
    %12 = tpu.matmul %10, %11, %cst_9 {dimension_numbers = #tpu.dot_dimension_numbers<[1], [0], [0], [1], [0, 0, 1, 1], [], []>} : vector<16x256xf32>, vector<256x128xf32>, vector<16x128xf32> -> vector<16x128xf32>
    %c0_10 = arith.constant 0 : index
    %c0_11 = arith.constant 0 : index
    %13 = vector.load %arg15[%c0_10, %c0_11] : memref<1x128xf32, #tpu.memory_space<vmem>>, vector<1x128xf32>
    %14 = vector.broadcast %13 : vector<1x128xf32> to vector<16x128xf32>
    %15 = arith.addf %12, %14 : vector<16x128xf32>
    %c0_12 = arith.constant 0 : index
    %c0_13 = arith.constant 0 : index
    %16 = vector.load %arg11[%c0_12, %c0_13] : memref<16x128xf32, #tpu.memory_space<vmem>>, vector<16x128xf32>
    tpu.vector_store %arg11[%c0_12, %c0_13], %15 {strides = array<i32>} : memref<16x128xf32, #tpu.memory_space<vmem>>, vector<16x128xf32>,
    %c0_14 = arith.constant 0 : index
    %c0_15 = arith.constant 0 : index
    %17 = vector.load %arg7[%c0_14, %c0_15] : memref<128x128xf32, #tpu.memory_space<vmem>>, vector<128x128xf32>
    %cst_16 = arith.constant dense<0.000000e+00> : vector<16x128xf32>
    %18 = tpu.matmul %15, %17, %cst_16 {dimension_numbers = #tpu.dot_dimension_numbers<[1], [0], [0], [1], [0, 0, 1, 1], [], []>} : vector<16x128xf32>, vector<128x128xf32>, vector<16x128xf32> -> vector<16x128xf32>
    %c0_17 = arith.constant 0 : index
    %c0_18 = arith.constant 0 : index
    %19 = vector.load %arg8[%c0_17, %c0_18] : memref<1x128xf32, #tpu.memory_space<vmem>>, vector<1x128xf32>
    %20 = vector.broadcast %19 : vector<1x128xf32> to vector<16x128xf32>
    %21 = arith.addf %18, %20 : vector<16x128xf32>
    %c0_19 = arith.constant 0 : index
    %c0_20 = arith.constant 0 : index
    %22 = vector.load %arg10[%c0_19, %c0_20] : memref<16x128xf32, #tpu.memory_space<vmem>>, vector<16x128xf32>
    tpu.vector_store %arg10[%c0_19, %c0_20], %21 {strides = array<i32>} : memref<16x128xf32, #tpu.memory_space<vmem>>, vector<16x128xf32>,
    return
  }
  func.func @transform_0(%arg0: i32, %arg1: i32) -> (i32, i32) {
    %c0_i32 = arith.constant 0 : i32
    %c0_i32_0 = arith.constant 0 : i32
    %c0_i32_1 = arith.constant 0 : i32
    return %c0_i32, %c0_i32_0 : i32, i32
  }
  func.func @transform_1(%arg0: i32, %arg1: i32) -> (i32, i32, i32) {
    %c0_i32 = arith.constant 0 : i32
    %c0_i32_0 = arith.constant 0 : i32
    %c0_i32_1 = arith.constant 0 : i32
    %c0_i32_2 = arith.constant 0 : i32
    return %c0_i32, %c0_i32_0, %c0_i32_1 : i32, i32, i32
  }
  func.func @transform_2(%arg0: i32, %arg1: i32) -> (i32, i32, i32) {
    %c0_i32 = arith.constant 0 : i32
    %c0_i32_0 = arith.constant 0 : i32
    %c0_i32_1 = arith.constant 0 : i32
    %c0_i32_2 = arith.constant 0 : i32
    return %c0_i32, %c0_i32_0, %c0_i32_1 : i32, i32, i32
  }
  func.func @transform_3(%arg0: i32, %arg1: i32) -> (i32, i32, i32) {
    %c0_i32 = arith.constant 0 : i32
    %c0_i32_0 = arith.constant 0 : i32
    %c0_i32_1 = arith.constant 0 : i32
    %c0_i32_2 = arith.constant 0 : i32
    return %c0_i32, %c0_i32_0, %c0_i32_1 : i32, i32, i32
  }
  func.func @transform_4(%arg0: i32, %arg1: i32) -> (i32, i32, i32) {
    %c0_i32 = arith.constant 0 : i32
    %c0_i32_0 = arith.constant 0 : i32
    %c0_i32_1 = arith.constant 0 : i32
    %c0_i32_2 = arith.constant 0 : i32
    return %c0_i32, %c0_i32_0, %c0_i32_1 : i32, i32, i32
  }
  func.func @transform_5(%arg0: i32, %arg1: i32) -> (i32, i32) {
    %c0_i32 = arith.constant 0 : i32
    %c0_i32_0 = arith.constant 0 : i32
    %c0_i32_1 = arith.constant 0 : i32
    return %c0_i32, %c0_i32_0 : i32, i32
  }
  func.func @transform_6(%arg0: i32, %arg1: i32) -> (i32, i32) {
    %c0_i32 = arith.constant 0 : i32
    %c0_i32_0 = arith.constant 0 : i32
    %c0_i32_1 = arith.constant 0 : i32
    return %c0_i32, %c0_i32_0 : i32, i32
  }
  func.func @transform_7(%arg0: i32, %arg1: i32) -> (i32, i32) {
    %c2_i32 = arith.constant 2 : i32
    %0 = arith.muli %arg0, %c2_i32 : i32
    %1 = arith.addi %0, %arg1 : i32
    %c0_i32 = arith.constant 0 : i32
    %c0_i32_0 = arith.constant 0 : i32
    return %1, %c0_i32 : i32, i32
  }
  func.func @transform_8(%arg0: i32, %arg1: i32) -> (i32, i32) {
    %c2_i32 = arith.constant 2 : i32
    %0 = arith.muli %arg0, %c2_i32 : i32
    %1 = arith.addi %0, %arg1 : i32
    %c0_i32 = arith.constant 0 : i32
    %c0_i32_0 = arith.constant 0 : i32
    return %1, %c0_i32 : i32, i32
  }
  func.func @transform_9(%arg0: i32, %arg1: i32) -> (i32, i32) {
    %c2_i32 = arith.constant 2 : i32
    %0 = arith.muli %arg0, %c2_i32 : i32
    %1 = arith.addi %0, %arg1 : i32
    %c0_i32 = arith.constant 0 : i32
    %c0_i32_0 = arith.constant 0 : i32
    return %1, %c0_i32 : i32, i32
  }
}

</mosaic_0001>

<bundles_post_ra>
// kernel: tpu_custom_call.1
= control target key start
LH: loop header
LB: loop body
LE: loop exit
PB: predicated region body
PF: predicated region fallthrough
CT: control target
= control target key end

     0   :  { %s2886_s0 = inlined_call_operand.hbm [shape: f32[4,3], index: 0, kind: input, shape index: {}]   ;;  %s2887_s1 = inlined_call_operand.hbm [shape: f32[3,96,256], index: 1, kind: input, shape index: {}]   ;;  %s2888_s2 = inlined_call_operand.vmem [shape: f32[3,1,256], index: 2, kind: input, shape index: {}]   ;;  %s2889_s3 = inlined_call_operand.hbm [shape: f32[3,256,128], index: 3, kind: input, shape index: {}]   ;;  %s2890_s4 = inlined_call_operand.vmem [shape: f32[3,1,128], index: 4, kind: input, shape index: {}]   ;;  %s2891_s5 = inlined_call_operand.hbm [shape: f32[128,128], index: 5, kind: input, shape index: {}]   ;;  %s2892_s6 = inlined_call_operand.vmem [shape: f32[1,128], index: 6, kind: input, shape index: {}]   ;;  %s2893_s7 = inlined_call_operand.hbm [shape: f32[64,96], index: 7, kind: input, shape index: {}]   ;;  %s2894_s8 = inlined_call_operand.hbm [shape: f32[64,128], index: 8, kind: output, shape index: {0}]   ;;  %s2895_s9 = inlined_call_operand.hbm [shape: f32[64,128], index: 9, kind: output, shape index: {1}]  }
   0x1   :  { %2909 = sst [smem:[#allocation28_spill]] %s2886_s0 }
   0x2   :  { %2910 = sst [smem:[#allocation29_spill]] %s2887_s1 }
   0x3   :  { %2911 = sst [smem:[#allocation30_spill]] %s2889_s3 }
   0x4   :  { %2912 = sst [smem:[#allocation31_spill]] %s2890_s4 }
   0x5   :  { %2913 = sst [smem:[#allocation32_spill]] %s2891_s5 }
   0x6   :  { %2914 = sst [smem:[#allocation33_spill]] %s2892_s6 }
   0x7   :  { %2915 = sst [smem:[#allocation34_spill]] %s2894_s8 }
   0x8   :  { %2916 = sst [smem:[#allocation35_spill]] %s2895_s9 }
   0x9   :  { %15 = vsyncpa [#allocation9], 0 }
   0xa   :  { %16 = vsyncpa [#allocation7], 0 }
   0xb   :  { %17 = vsyncpa [#allocation12], 0 }
   0xc   :  { %18 = vsyncpa [#allocation15], 0 }
   0xd   :  { %20 = vsyncpa [#allocation15 + $0x1], 0 }
   0xe   :  { %21 = vsyncpa [#allocation8], 0 }
   0xf   :  { %23 = vsyncpa [#allocation8 + $0x1], 0 }
  0x10   :  { %24 = vsyncpa [#allocation18], 0 }
  0x11   :  { %26 = vsyncpa [#allocation18 + $0x1], 0  ;;  %s2265_s30 = smov 0   ;;  %s2267_s10 = smov 0  }
  0x12   :  { %s2269_s11 = smov 0   ;;  %s2271_s12 = smov 0  }
  0x13   :  { %s2273_s13 = smov 0   ;;  %s2275_s14 = smov 0  }
  0x14   :  { %s2277_s15 = smov 0   ;;  %s2279_s16 = smov 0  }
  0x15 LB: > { %2917 = sst [smem:[#allocation25_spill]] %s2171_s30  ;;  %s1561_s17 = sadd.s32 4294967295, %s2199_s16   ;;  %s2199_s16 = sphi %s2279_s16, %s32_s16   ;;  %s2195_s15 = sphi %s2277_s15, %s2956_s15   ;;  %s2191_s14 = sphi %s2275_s14, %s2955_s14   ;;  %s2187_s13 = sphi %s2273_s13, %s2954_s13   ;;  %s2183_s12 = sphi %s2271_s12, %s2953_s12   ;;  %s2179_s11 = sphi %s2269_s11, %s2952_s11   ;;  %s2175_s10 = sphi %s2267_s10, %s2951_s10   ;;  %s2171_s30 = sphi %s2265_s30, %s2950_s30  }
  0x16   : > { %2918 = sst [smem:[#allocation26_spill]] %s2187_s13  ;;  %s1562_s18 = sadd.s32 4294967294, %s2199_s16  }
  0x17   : > { %p215_p0 = scmp.ne.s32.totalorder %s2175_s10, %s2171_s30  ;;  %p2309_p1 = scmp.eq.s32.totalorder %s1561_s17, 0 }
  0x18   : > { %p2313_p2 = scmp.eq.s32.totalorder %s1561_s17, 3  ;;  %p249_p3 = scmp.eq.s32.totalorder %s1562_s18, 3 }
  0x19   : > { %s2919_s19 = scalar_select %p2309_p1, 1, 0 }
  0x1a   : > { %s2920_s20 = scalar_select %p2313_p2, 1, 0 }
  0x1b   : > { %p2319_p4 = por %p2309_p1, %p215_p0  ;;  %p1569_p5 = scmp.ge.s32.totalorder %s2199_s16, 1 }
  0x1c   : > { %p2324_p6 = por %p249_p3, %p215_p0  ;;  %p286_p7 = scmp.lt.s32.totalorder %s2199_s16, 5 }
  0x1d   : > { %s2921_s21 = scalar_select %p2319_p4, 1, 0 }
  0x1e   : > { %s2922_s22 = scalar_select %p2324_p6, 1, 0 }
  0x1f   : > { %p2329_p8 = pnand %p1569_p5, %p286_p7  ;;  %s2201_s24 = smov [#allocation11]  }
  0x20   : > { %2923 = sst [smem:[#allocation27_spill]] %s2922_s22  ;;  %s323_s25 = sshll.u32 %s2201_s24, 4  ;;  %s324_s25 = int_to_ptr.vmem [resolvable:$true] %s323_s25 }
  0x21   : > { %s2924_s23 = scalar_select %p2329_p8, 1, 0 }
  0x22   : > { %p1821_p9 = pneg %p2329_p8  ;;  %s2926_s3 = sld [smem:[#allocation30_spill]] }
  0x24   : > { %p2337_p10 = pnand %p1821_p9, %p2309_p1 }
  0x26   : > { %p2349_p12 = pneg %p2337_p10 }
  0x28   : > { %s1930_s29 = scalar_lea.hbm %s2926_s3, 12288 }
  0x29   : > { %p1931_p11 = scmp.ne.s32.totalorder %s2926_s3, %s1930_s29  ;;  %p1937_p3 = scmp.lt.u32.totalorder %s1930_s29, %s2926_s3 }
  0x2b   : > { %p1933_p13 = pnand %p2349_p12, %p1931_p11 }
  0x2d   : > { %p1934_p0 = pneg %p1933_p13 }
  0x2f   : > { %p1939_p5 = pnand %p1937_p3, %p1934_p0 }
  0x31   : > { %1942 = shalt.err (!%p1939_p5)
}
  0x32   : > { %s1943_s27 = scalar_lea.vmem %s324_s25, 12288  ;;  %p1951_p4 = scmp.lt.s32.totalorder %s324_s25, %s324_s25 }
  0x33   : > { %p1944_p7 = scmp.ne.s32.totalorder %s324_s25, %s1943_s27  ;;  %p1952_p1 = scmp.lt.s32.totalorder %s1943_s27, %s1943_s27 }
  0x35   : > { %p1946_p9 = pnand %p1944_p7, %p2349_p12  ;;  %p1953_p8 = por %p1952_p1, %p1951_p4 }
  0x37   : > { %p1947_p6 = pneg %p1946_p9 }
  0x39   : > { %p1954_p2 = pnand %p1953_p8, %p1947_p6 }
  0x3b   : > { %1957 = shalt.err (!%p1954_p2)
}
  0x3c   : > { %s2905_s28 = smov 128   ;;  %s2907_s17 = smov 8  }
  0x3d   : > { %1830 = dma.hbm_to_vmem [thread:$0]  (!%p2337_p10), %s2926_s3, 12288, %s324_s25, [#allocation12], %s2905_s28, %s2905_s28, %s2907_s17  }
  0x3e   : > { %s2928_s0 = sld [smem:[#allocation28_spill]] }
  0x44   : > { %s1958_s8 = scalar_lea.hbm %s2928_s0, 64 }
  0x45   : > { %p1959_p1 = scmp.ne.s32.totalorder %s2928_s0, %s1958_s8  ;;  %p1965_p6 = scmp.lt.u32.totalorder %s1958_s8, %s2928_s0 }
  0x47   : > { %p1961_p2 = pnand %p1959_p1, %p2349_p12 }
  0x49   : > { %p1962_p4 = pneg %p1961_p2 }
  0x4b   : > { %p1967_p8 = pnand %p1965_p6, %p1962_p4 }
  0x4d   : > { %1970 = shalt.err (!%p1967_p8)
}
  0x4e   : > { %s2204_s4 = smov [#allocation6]   ;;  %s2205_s22 = smov [#allocation10]  }
  0x4f   : > { %1824 = dma.hbm_to_smem (!%p2337_p10), %s2928_s0, 64, %s2204_s4, [#allocation9]  }
  0x50   : > { %s307_s6 = sshll.u32 %s2205_s22, 4  ;;  %s2929_s1 = sld [smem:[#allocation29_spill]]  ;;  %s308_s6 = int_to_ptr.vmem [resolvable:$true] %s307_s6 }
  0x56   : > { %s1971_s27 = scalar_lea.hbm %s2929_s1, 9216 }
  0x57   : > { %p1972_p11 = scmp.ne.s32.totalorder %s2929_s1, %s1971_s27  ;;  %p1978_p3 = scmp.lt.u32.totalorder %s1971_s27, %s2929_s1 }
  0x59   : > { %p1974_p13 = pnand %p1972_p11, %p2349_p12 }
  0x5b   : > { %p1975_p0 = pneg %p1974_p13 }
  0x5d   : > { %p1980_p5 = pnand %p1978_p3, %p1975_p0 }
  0x5f   : > { %1983 = shalt.err (!%p1980_p5)
}
  0x60   : > { %s1984_s4 = scalar_lea.vmem %s308_s6, 9216  ;;  %p1992_p2 = scmp.lt.s32.totalorder %s308_s6, %s308_s6 }
  0x61   : > { %p1985_p7 = scmp.ne.s32.totalorder %s308_s6, %s1984_s4  ;;  %p1993_p4 = scmp.lt.s32.totalorder %s1984_s4, %s1984_s4 }
  0x63   : > { %p1987_p9 = pnand %p1985_p7, %p2349_p12  ;;  %p1994_p6 = por %p1993_p4, %p1992_p2 }
  0x65   : > { %p1988_p1 = pneg %p1987_p9 }
  0x67   : > { %p1995_p8 = pnand %p1994_p6, %p1988_p1 }
  0x69   : > { %1998 = shalt.err (!%p1995_p8)
}
  0x6a   : > { %s2206_s28 = smov 256   ;;  %s2207_s25 = smov 16  }
  0x6b   : > { %1827 = dma.hbm_to_vmem [thread:$0]  (!%p2337_p10), %s2929_s1, 9216, %s308_s6, [#allocation7], %s2206_s28, %s2206_s28, %s2207_s25  }
  0x6c   : > { %s2208_s29 = smov [#allocation13]   ;;  %s2930_s5 = sld [smem:[#allocation32_spill]] }
  0x6d   : > { %s339_s18 = sshll.u32 %s2208_s29, 4  ;;  %s340_s18 = int_to_ptr.vmem [resolvable:$true] %s339_s18 }
  0x72   : > { %s1999_s8 = scalar_lea.hbm %s2930_s5, 2048 }
  0x73   : > { %p2000_p11 = scmp.ne.s32.totalorder %s2930_s5, %s1999_s8  ;;  %p2006_p3 = scmp.lt.u32.totalorder %s1999_s8, %s2930_s5 }
  0x75   : > { %p2002_p13 = pnand %p2000_p11, %p2349_p12 }
  0x77   : > { %p2003_p0 = pneg %p2002_p13 }
  0x79   : > { %p2008_p5 = pnand %p2006_p3, %p2003_p0 }
  0x7b   : > { %2011 = shalt.err (!%p2008_p5)
}
  0x7c   : > { %s2012_s6 = scalar_lea.vmem %s340_s18, 2048  ;;  %p2020_p2 = scmp.lt.s32.totalorder %s340_s18, %s340_s18 }
  0x7d   : > { %p2013_p7 = scmp.ne.s32.totalorder %s340_s18, %s2012_s6  ;;  %p2021_p4 = scmp.lt.s32.totalorder %s2012_s6, %s2012_s6 }
  0x7f   : > { %p2015_p9 = pnand %p2013_p7, %p2349_p12  ;;  %p2022_p6 = por %p2021_p4, %p2020_p2 }
  0x81   : > { %p2016_p1 = pneg %p2015_p9 }
  0x83   : > { %p2023_p8 = pnand %p2022_p6, %p2016_p1 }
  0x85   : > { %2026 = shalt.err (!%p2023_p8)
}
  0x86   : > { %s2931_s28 = smov 8   ;;  %s2932_s25 = smov 128  }
  0x87   : > { %1833 = dma.hbm_to_vmem [thread:$0]  (!%p2337_p10), %s2930_s5, 2048, %s340_s18, [#allocation12], %s2932_s25, %s2932_s25, %s2931_s28  }
  0x88   : > { %s41_s26 = sadd.s32 1, %s2191_s14  ;;  %s44_s24 = sadd.s32 1, %s2195_s15 }
  0x89   : > { %p42_p12 = scmp.ge.s32.totalorder %s41_s26, 2  ;;  %s1563_s30 = sshll.u32 %s2195_s15, 1 }
  0x8a   : > { %s196_s22 = sadd.s32 %s2191_s14, %s1563_s30  ;;  %s202_s29 = sadd.s32 1, %s2179_s11 }
  0x8b   : > { %s2958_s26 = smov (%p42_p12, %s41_s26), 0  ;;  %s2960_s24 = smov (!%p42_p12, %s44_s24), %s2195_s15 }
  0x8c   : > { %p209_p11 = scmp.ne.s32.totalorder %s2179_s11, %s2175_s10  ;;  %p210_p13 = scmp.eq.s32.totalorder %s2199_s16, 0 }
  0x8d   : > { %p46_p0 = scmp.ge.s32.totalorder %s2960_s24, 2  ;;  %p1849_p3 = scmp.lt.s32.totalorder %s2199_s16, 4 }
  0x8e   : > { %p2435_p5 = por %p210_p13, %p209_p11  ;;  %p2934_p10 = scmp.ne.s32.totalorder %s2920_s20, 0 }
  0x8f   : > { %s2962_s24 = smov (%p46_p0, %s2960_s24), 0  ;;  %s356_s9 = sand.u32 1, %s2179_s11  }
  0x90   : > { %p2441_p7 = por %p2934_p10, %p209_p11  ;;  %s1617_s8 = sshll.u32 %s196_s22, 8 }
  0x91   : > { %s1564_s13 = sshll.u32 %s2962_s24, 1  ;;  %s1575_s6 = sshll.u32 %s356_s9, 4 }
  0x92   : > { %s198_s4 = sadd.s32 %s1564_s13, %s2958_s26  ;;  %s2453_s1 = scalar_lea.hbm %s2893_s7, %s1617_s8 }
  0x93   : > { %s199_s0 = ssub.s32 %s196_s22, %s198_s4  ;;  %s360_s20 = scalar_lea.vmem [#allocation14], %s1575_s6 }
  0x94   : > { %p200_p9 = scmp.eq.s32.totalorder %s199_s0, 0  ;;  %s369_s3 = sshll.u32 %s360_s20, 4  ;;  %s2466_s3 = int_to_ptr.vmem [resolvable:$true] %s369_s3 }
  0x95   : > { %p2459_p1 = pnand %p1849_p3, %p2435_p5  ;;  %s2468_s8 = scalar_lea.sflag [#allocation15], %s356_s9 }
  0x96   : > { %s2464_s22 = scalar_select %p200_p9, %s2179_s11, %s202_s29  }
  0x97   : > { %s2027_s13 = scalar_lea.hbm %s2453_s1, 256  ;;  %p2029_p4 = pneg %p2459_p1 }
  0x98   : > { %p2028_p2 = scmp.ne.s32.totalorder %s2453_s1, %s2027_s13  ;;  %s2032_s6 = scalar_lea.hbm %s2893_s7, 1024 }
  0x99   : > { %p2033_p12 = scmp.lt.u32.totalorder %s2453_s1, %s2893_s7  ;;  %p2034_p11 = scmp.lt.u32.totalorder %s2032_s6, %s2027_s13 }
  0x9a   : > { %p2030_p6 = pnand %p2029_p4, %p2028_p2  ;;  %p2036_p0 = scmp.lt.u32.totalorder %s2027_s13, %s2453_s1 }
  0x9b   : > { %p2035_p13 = por %p2034_p11, %p2033_p12 }
  0x9c   : > { %p2031_p8 = pneg %p2030_p6 }
  0x9d   : > { %p2037_p3 = por %p2036_p0, %p2035_p13 }
  0x9f   : > { %p2038_p5 = pnand %p2037_p3, %p2031_p8 }
  0xa1   : > { %2041 = shalt.err (!%p2038_p5)
}
  0xa2   : > { %s2042_s29 = scalar_lea.vmem %s2466_s3, 256  ;;  %s2209_s9 = smov [#allocation14]  }
  0xa3   : > { %p2043_p10 = scmp.ne.s32.totalorder %s2466_s3, %s2042_s29  ;;  %s2047_s30 = sshll.u32 %s2209_s9, 4  ;;  %s2048_s30 = int_to_ptr.vmem [resolvable:$false] %s2047_s30 }
  0xa4   : > { %s2049_s20 = scalar_lea.vmem %s2048_s30, 512  ;;  %p2050_p6 = scmp.lt.s32.totalorder %s2466_s3, %s2048_s30 }
  0xa5   : > { %p2045_p9 = pnand %p2043_p10, %p2029_p4  ;;  %p2051_p12 = scmp.lt.s32.totalorder %s2049_s20, %s2042_s29 }
  0xa7   : > { %p2046_p2 = pneg %p2045_p9  ;;  %p2052_p11 = por %p2051_p12, %p2050_p6 }
  0xa9   : > { %p2053_p13 = pnand %p2052_p11, %p2046_p2 }
  0xab   : > { %2056 = shalt.err (!%p2053_p13)
}
  0xac   : > { %1837 = dma.hbm_to_vmem [thread:$0]  (!%p2459_p1), %s2453_s1, 256, %s2466_s3, %s2468_s8, %s2932_s25, %s2932_s25, %s2931_s28  }
  0xad   : > { %p2937_p4 = scmp.ne.s32.totalorder %s2924_s23, 0 }
  0xae   : > { %p2938_p8 = scmp.ne.s32.totalorder (!%p2937_p4), %s2919_s19, 0 }
  0xaf   : > { %381 = sbr.rel (%p2937_p4) target bundleno = 977 (0x3d1), region = 52 }
  0xb6   : > { %2146 = dma.done.wait (%p2938_p8), [#allocation9], 64  }
  0xb7   : > { %2148 = vsyncadd (%p2938_p8), [#allocation9], 4294967232 }
  0xb8   : > { %2150 = dma.done.wait (%p2938_p8), [#allocation7], 9216  }
  0xb9   : > { %2152 = vsyncadd (%p2938_p8), [#allocation7], 4294958080 }
  0xba   : > { %2154 = dma.done.wait (%p2938_p8), [#allocation12], 14336  }
  0xbb   : > { %2156 = vsyncadd (%p2938_p8), [#allocation12], 4294952960  ;;  %s2514_s1 = sand.u32 1, %s2175_s10   ;;  %p2939_p1 = scmp.ne.s32.totalorder %s2921_s21, 0 }
  0xbc   : > { %s2517_s3 = sshll.u32 %s2514_s1, 4  ;;  %s400_s5 = scalar_lea.sflag [#allocation15], %s2514_s1 }
  0xbd   : > { %s403_s23 = scalar_lea.vmem [#allocation14], %s2517_s3 }
  0xbe   : > { %2158 = dma.done.wait (%p2939_p1), %s400_s5, 256  }
  0xbf   : > { %2160 = vsyncadd (%p2939_p1), %s400_s5, 4294967040 }
  0xc0   : > { %408 = sfence }
  0xc1   : > { %s2526_s19 = scalar_lea.vmem [#allocation16], %s2517_s3  ;;  %s2529_s28 = scalar_lea.vmem [#allocation17], %s2517_s3 }
  0xc2   : > { %p1587_p0 = scmp.ne.s32.totalorder %s2183_s12, 0 }
  0xc3   : > { %s457_s25 = sld [smem:[#allocation6]] (!%p1587_p0)  ;;  %s1591_s8 = sld [smem:[#allocation6 + $0x1]] (!%p1587_p0)  ;;  %v458_v0 = vld [vmem:[#allocation10] sm:$0xff] (!%p1587_p0)  ;;  %v459_v3 = vld [vmem:[#allocation10 + $0x8] sm:$0xff] (!%p1587_p0)  ;;  %v460_v6 = vld [vmem:[#allocation10 + $0x10] sm:$0xff] (!%p1587_p0)  ;;  %v977_v12 = vlaneseq (!%p1587_p0) }
  0xc4   : > { %456 = sbr.rel (%p1587_p0) target bundleno = 282 (0x11a), region = 76  ;;  %s1597_s13 = sld [smem:[#allocation6 + $0x2]] (!%p1587_p0)  ;;  %v583_v1 = vld [vmem:[#allocation10 + $0xc0] sm:$0xff] (!%p1587_p0)  ;;  %v584_v4 = vld [vmem:[#allocation10 + $0xc8] sm:$0xff] (!%p1587_p0)  ;;  %v585_v9 = vld [vmem:[#allocation10 + $0xd0] sm:$0xff] (!%p1587_p0) }
  0xc5   : > { %v769_v2 = vld [vmem:[#allocation10 + $0x180] sm:$0xff] (!%p1587_p0)  ;;  %v770_v5 = vld [vmem:[#allocation10 + $0x188] sm:$0xff] (!%p1587_p0)  ;;  %v771_v10 = vld [vmem:[#allocation10 + $0x190] sm:$0xff] (!%p1587_p0)  ;;  %s2593_s21 = sld [smem:[#allocation6 + $0x80]] (!%p1587_p0)  ;;  %s2595_s27 = sld [smem:[#allocation6 + $0x81]] (!%p1587_p0)  ;;  %vm2614_vm0 = vcmp.lt.s32.totalorder (!%p1587_p0), %v977_v12, 256 }
  0xc6   : > { %v461_v11 = vld [vmem:[#allocation10 + $0x18] sm:$0xff] (!%p1587_p0)  ;;  %v462_v19 = vld [vmem:[#allocation10 + $0x20] sm:$0xff] (!%p1587_p0)  ;;  %v463_v30 = vld [vmem:[#allocation10 + $0x28] sm:$0xff] (!%p1587_p0)  ;;  %s2599_s4 = sld [smem:[#allocation6 + $0x82]] (!%p1587_p0)  ;;  %s2604_s6 = sld [smem:[#allocation6 + $0x100]] (!%p1587_p0) }
  0xc7   : > { %v586_v17 = vld [vmem:[#allocation10 + $0xd8] sm:$0xff] (!%p1587_p0)  ;;  %v587_v24 = vld [vmem:[#allocation10 + $0xe0] sm:$0xff] (!%p1587_p0)  ;;  %v588_v31 = vld [vmem:[#allocation10 + $0xe8] sm:$0xff] (!%p1587_p0)  ;;  %s2606_s0 = sld [smem:[#allocation6 + $0x101]] (!%p1587_p0)  ;;  %s2618_s17 = sld [smem:[#allocation6 + $0x102]] (!%p1587_p0) }
  0xc8   : > { %v772_v18 = vld [vmem:[#allocation10 + $0x198] sm:$0xff] (!%p1587_p0)  ;;  %v773_v25 = vld [vmem:[#allocation10 + $0x1a0] sm:$0xff] (!%p1587_p0)  ;;  %v774_v36 = vld [vmem:[#allocation10 + $0x1a8] sm:$0xff] (!%p1587_p0) }
  0xc9   : > { %v2532_v7 = vstv (!%p1587_p0), %s457_s25  ;;  %v2534_v8 = vstv (!%p1587_p0), %s1591_s8  ;;  %v464_v37 = vld [vmem:[#allocation10 + $0x30] sm:$0xff] (!%p1587_p0)  ;;  %v465_v48 = vld [vmem:[#allocation10 + $0x38] sm:$0xff] (!%p1587_p0)  ;;  %v466_v55 = vld [vmem:[#allocation10 + $0x40] sm:$0xff] (!%p1587_p0)  ;;  %s2727_s8 = sld [smem:[#allocation6 + $0x180]] (!%p1587_p0) }
  0xca   : > { %v483_v13 = vmul.f32 (!%p1587_p0), %v2532_v7, %v458_v0  ;;  %v608_v14 = vmul.f32 (!%p1587_p0), %v2534_v8, %v583_v1  ;;  %v2538_v15 = vstv (!%p1587_p0), %s1597_s13  ;;  %v484_v16 = vmul.f32 (!%p1587_p0), %v2532_v7, %v459_v3  ;;  %v589_v42 = vld [vmem:[#allocation10 + $0xf0] sm:$0xff] (!%p1587_p0)  ;;  %v590_v49 = vld [vmem:[#allocation10 + $0xf8] sm:$0xff] (!%p1587_p0)  ;;  %v591_v56 = vld [vmem:[#allocation10 + $0x100] sm:$0xff] (!%p1587_p0)  ;;  %s2729_s13 = sld [smem:[#allocation6 + $0x181]] (!%p1587_p0) }
  0xcb   : > { %v794_v20 = vmul.f32 %v2538_v15, %v769_v2  ;;  %v609_v21 = vmul.f32 %v2534_v8, %v584_v4  ;;  %v795_v22 = vmul.f32 %v2538_v15, %v770_v5  ;;  %v485_v23 = vmul.f32 %v2532_v7, %v460_v6  ;;  %v775_v43 = vld [vmem:[#allocation10 + $0x1b0] sm:$0xff]  ;;  %v776_v50 = vld [vmem:[#allocation10 + $0x1b8] sm:$0xff]  ;;  %v777_v61 = vld [vmem:[#allocation10 + $0x1c0] sm:$0xff] }
  0xcc   : > { %v632_v26 = vadd.f32 %v608_v14, %v483_v13  ;;  %v610_v27 = vmul.f32 %v2534_v8, %v585_v9  ;;  %v796_v28 = vmul.f32 %v2538_v15, %v771_v10  ;;  %v486_v29 = vmul.f32 %v2532_v7, %v461_v11  ;;  %v467_v62 = vld [vmem:[#allocation10 + $0x48] sm:$0xff]  ;;  %v468_v5 = vld [vmem:[#allocation10 + $0x50] sm:$0xff] }
  0xcd   : > { %v633_v32 = vadd.f32 %v609_v21, %v484_v16  ;;  %v611_v33 = vmul.f32 %v2534_v8, %v586_v17  ;;  %v797_v34 = vmul.f32 %v2538_v15, %v772_v18  ;;  %v487_v35 = vmul.f32 %v2532_v7, %v462_v19  ;;  %v592_v63 = vld [vmem:[#allocation10 + $0x108] sm:$0xff]  ;;  %v593_v13 = vld [vmem:[#allocation10 + $0x110] sm:$0xff]  ;;  %v594_v21 = vld [vmem:[#allocation10 + $0x118] sm:$0xff] }
  0xce   : > { %v818_v38 = vadd.f32 %v794_v20, %v632_v26  ;;  %v634_v39 = vadd.f32 %v610_v27, %v485_v23  ;;  %v612_v40 = vmul.f32 %v2534_v8, %v587_v24  ;;  %v798_v41 = vmul.f32 %v2538_v15, %v773_v25  ;;  %v778_v4 = vld [vmem:[#allocation10 + $0x1c8] sm:$0xff]  ;;  %v779_v14 = vld [vmem:[#allocation10 + $0x1d0] sm:$0xff]  ;;  %v469_v20 = vld [vmem:[#allocation10 + $0x58] sm:$0xff] }
  0xcf   : > { %v819_v44 = vadd.f32 %v795_v22, %v633_v32  ;;  %v635_v45 = vadd.f32 %v611_v33, %v486_v29  ;;  %v488_v46 = vmul.f32 %v2532_v7, %v463_v30  ;;  %v613_v47 = vmul.f32 %v2534_v8, %v588_v31  ;;  %v780_v22 = vld [vmem:[#allocation10 + $0x1d8] sm:$0xff]  ;;  %v470_v27 = vld [vmem:[#allocation10 + $0x60] sm:$0xff] }
  0xd0   : > { %953 = vst [vmem:[#allocation2] sm:$0xff] %v818_v38  ;;  %v820_v51 = vadd.f32 %v796_v28, %v634_v39  ;;  %v636_v52 = vadd.f32 %v612_v40, %v487_v35  ;;  %v799_v53 = vmul.f32 %v2538_v15, %v774_v36  ;;  %v489_v54 = vmul.f32 %v2532_v7, %v464_v37  ;;  %v595_v28 = vld [vmem:[#allocation10 + $0x120] sm:$0xff]  ;;  %v596_v35 = vld [vmem:[#allocation10 + $0x128] sm:$0xff] }
  0xd1   : > { %954 = vst [vmem:[#allocation2 + $0x8] sm:$0xff] %v819_v44  ;;  %v821_v57 = vadd.f32 %v797_v34, %v635_v45  ;;  %v637_v58 = vadd.f32 %v613_v47, %v488_v46  ;;  %v614_v59 = vmul.f32 %v2534_v8, %v589_v42  ;;  %v800_v60 = vmul.f32 %v2538_v15, %v775_v43  ;;  %v781_v33 = vld [vmem:[#allocation10 + $0x1e0] sm:$0xff]  ;;  %v471_v34 = vld [vmem:[#allocation10 + $0x68] sm:$0xff]  ;;  %v597_v46 = vld [vmem:[#allocation10 + $0x130] sm:$0xff] }
  0xd2   : > { %955 = vst [vmem:[#allocation2 + $0x10] sm:$0xff] %v820_v51  ;;  %v822_v0 = vadd.f32 %v798_v41, %v636_v52  ;;  %v490_v1 = vmul.f32 %v2532_v7, %v465_v48  ;;  %v615_v2 = vmul.f32 %v2534_v8, %v590_v49  ;;  %v801_v3 = vmul.f32 %v2538_v15, %v776_v50  ;;  %v782_v40 = vld [vmem:[#allocation10 + $0x1e8] sm:$0xff]  ;;  %v472_v41 = vld [vmem:[#allocation10 + $0x70] sm:$0xff]  ;;  %v473_v52 = vld [vmem:[#allocation10 + $0x78] sm:$0xff] }
  0xd3   : > { %956 = vst [vmem:[#allocation2 + $0x18] sm:$0xff] %v821_v57  ;;  %v823_v6 = vadd.f32 %v799_v53, %v637_v58  ;;  %v638_v9 = vadd.f32 %v614_v59, %v489_v54  ;;  %v491_v10 = vmul.f32 %v2532_v7, %v466_v55  ;;  %v616_v11 = vmul.f32 %v2534_v8, %v591_v56  ;;  %v783_v47 = vld [vmem:[#allocation10 + $0x1f0] sm:$0xff]  ;;  %v598_v53 = vld [vmem:[#allocation10 + $0x138] sm:$0xff]  ;;  %v474_v59 = vld [vmem:[#allocation10 + $0x80] sm:$0xff] }
  0xd4   : > { %957 = vst [vmem:[#allocation2 + $0x20] sm:$0xff] %v822_v0  ;;  %v639_v16 = vadd.f32 %v615_v2, %v490_v1  ;;  %v802_v17 = vmul.f32 %v2538_v15, %v777_v61  ;;  %v492_v18 = vmul.f32 %v2532_v7, %v467_v62  ;;  %v617_v19 = vmul.f32 %v2534_v8, %v592_v63  ;;  %v784_v54 = vld [vmem:[#allocation10 + $0x1f8] sm:$0xff]  ;;  %v785_v1 = vld [vmem:[#allocation10 + $0x200] sm:$0xff]  ;;  %v475_v2 = vld [vmem:[#allocation10 + $0x88] sm:$0xff] }
  0xd5   : > { %958 = vst [vmem:[#allocation2 + $0x28] sm:$0xff] %v823_v6  ;;  %v824_v23 = vadd.f32 %v800_v60, %v638_v9  ;;  %v640_v24 = vadd.f32 %v616_v11, %v491_v10  ;;  %v803_v25 = vmul.f32 %v2538_v15, %v778_v4  ;;  %v493_v26 = vmul.f32 %v2532_v7, %v468_v5  ;;  %v599_v60 = vld [vmem:[#allocation10 + $0x140] sm:$0xff]  ;;  %v786_v10 = vld [vmem:[#allocation10 + $0x208] sm:$0xff]  ;;  %v476_v11 = vld [vmem:[#allocation10 + $0x90] sm:$0xff] }
  0xd6   : > { %v825_v29 = vadd.f32 %v801_v3, %v639_v16  ;;  %v641_v30 = vadd.f32 %v617_v19, %v492_v18  ;;  %v618_v31 = vmul.f32 %v2534_v8, %v593_v13  ;;  %v804_v32 = vmul.f32 %v2538_v15, %v779_v14  ;;  %v600_v3 = vld [vmem:[#allocation10 + $0x148] sm:$0xff]  ;;  %v601_v18 = vld [vmem:[#allocation10 + $0x150] sm:$0xff] }
  0xd7   : > { %959 = vst [vmem:[#allocation2 + $0x30] sm:$0xff] %v824_v23  ;;  %v826_v36 = vadd.f32 %v802_v17, %v640_v24  ;;  %v494_v37 = vmul.f32 %v2532_v7, %v469_v20  ;;  %v619_v38 = vmul.f32 %v2534_v8, %v594_v21  ;;  %v805_v39 = vmul.f32 %v2538_v15, %v780_v22  ;;  %v787_v19 = vld [vmem:[#allocation10 + $0x210] sm:$0xff]  ;;  %v477_v24 = vld [vmem:[#allocation10 + $0x98] sm:$0xff] }
  0xd8   : > { %960 = vst [vmem:[#allocation2 + $0x38] sm:$0xff] %v825_v29  ;;  %v827_v42 = vadd.f32 %v803_v25, %v641_v30  ;;  %v642_v43 = vadd.f32 %v618_v31, %v493_v26  ;;  %v495_v44 = vmul.f32 %v2532_v7, %v470_v27  ;;  %v620_v45 = vmul.f32 %v2534_v8, %v595_v28  ;;  %v602_v25 = vld [vmem:[#allocation10 + $0x158] sm:$0xff]  ;;  %v478_v31 = vld [vmem:[#allocation10 + $0xa0] sm:$0xff] }
  0xd9   : > { %961 = vst [vmem:[#allocation2 + $0x40] sm:$0xff] %v826_v36  ;;  %v643_v48 = vadd.f32 %v619_v38, %v494_v37  ;;  %v806_v49 = vmul.f32 %v2538_v15, %v781_v33  ;;  %v496_v50 = vmul.f32 %v2532_v7, %v471_v34  ;;  %v621_v51 = vmul.f32 %v2534_v8, %v596_v35  ;;  %v788_v26 = vld [vmem:[#allocation10 + $0x218] sm:$0xff]  ;;  %v789_v37 = vld [vmem:[#allocation10 + $0x220] sm:$0xff]  ;;  %v479_v38 = vld [vmem:[#allocation10 + $0xa8] sm:$0xff] }
  0xda   : > { %962 = vst [vmem:[#allocation2 + $0x48] sm:$0xff] %v827_v42  ;;  %v828_v55 = vadd.f32 %v804_v32, %v642_v43  ;;  %v644_v56 = vadd.f32 %v620_v45, %v495_v44  ;;  %v807_v57 = vmul.f32 %v2538_v15, %v782_v40  ;;  %v497_v58 = vmul.f32 %v2532_v7, %v472_v41  ;;  %v603_v32 = vld [vmem:[#allocation10 + $0x160] sm:$0xff]  ;;  %v790_v44 = vld [vmem:[#allocation10 + $0x228] sm:$0xff]  ;;  %v480_v45 = vld [vmem:[#allocation10 + $0xb0] sm:$0xff] }
  0xdb   : > { %v829_v61 = vadd.f32 %v805_v39, %v643_v48  ;;  %v645_v62 = vadd.f32 %v621_v51, %v496_v50  ;;  %v622_v63 = vmul.f32 %v2534_v8, %v597_v46  ;;  %v808_v0 = vmul.f32 %v2538_v15, %v783_v47  ;;  %v604_v39 = vld [vmem:[#allocation10 + $0x168] sm:$0xff]  ;;  %v605_v50 = vld [vmem:[#allocation10 + $0x170] sm:$0xff] }
  0xdc   : > { %963 = vst [vmem:[#allocation2 + $0x50] sm:$0xff] %v828_v55  ;;  %v830_v4 = vadd.f32 %v806_v49, %v644_v56  ;;  %v498_v5 = vmul.f32 %v2532_v7, %v473_v52  ;;  %v623_v6 = vmul.f32 %v2534_v8, %v598_v53  ;;  %v809_v9 = vmul.f32 %v2538_v15, %v784_v54  ;;  %v791_v51 = vld [vmem:[#allocation10 + $0x230] sm:$0xff]  ;;  %v481_v56 = vld [vmem:[#allocation10 + $0xb8] sm:$0xff] }
  0xdd   : > { %964 = vst [vmem:[#allocation2 + $0x58] sm:$0xff] %v829_v61  ;;  %v831_v13 = vadd.f32 %v807_v57, %v645_v62  ;;  %v646_v14 = vadd.f32 %v622_v63, %v497_v58  ;;  %v499_v16 = vmul.f32 %v2532_v7, %v474_v59  ;;  %v624_v17 = vmul.f32 %v2534_v8, %v599_v60  ;;  %v606_v57 = vld [vmem:[#allocation10 + $0x178] sm:$0xff] }
  0xde   : > { %965 = vst [vmem:[#allocation2 + $0x60] sm:$0xff] %v830_v4  ;;  %v647_v20 = vadd.f32 %v623_v6, %v498_v5  ;;  %v810_v21 = vmul.f32 %v2538_v15, %v785_v1  ;;  %v500_v22 = vmul.f32 %v2532_v7, %v475_v2  ;;  %v625_v23 = vmul.f32 %v2534_v8, %v600_v3  ;;  %v792_v58 = vld [vmem:[#allocation10 + $0x238] sm:$0xff]  ;;  %v508_v3 = vld [vmem:[%s2888_s2] sm:$0x3] }
  0xdf   : > { %966 = vst [vmem:[#allocation2 + $0x68] sm:$0xff] %v831_v13  ;;  %v832_v27 = vadd.f32 %v808_v0, %v646_v14  ;;  %v648_v28 = vadd.f32 %v624_v17, %v499_v16  ;;  %v811_v29 = vmul.f32 %v2538_v15, %v786_v10  ;;  %v501_v30 = vmul.f32 %v2532_v7, %v476_v11  ;;  %v1593_v4 = vld [vmem:[%s2888_s2 + $0x2] sm:$0x3]  ;;  %v1599_v11 = vld [vmem:[%s2888_s2 + $0x4] sm:$0x3] }
  0xe0   : > { %v833_v33 = vadd.f32 %v809_v9, %v647_v20  ;;  %v649_v34 = vadd.f32 %v625_v23, %v500_v22  ;;  %v626_v35 = vmul.f32 %v2534_v8, %v601_v18  ;;  %v812_v36 = vmul.f32 %v2538_v15, %v787_v19  ;;  %v512_v18 = vld [vmem:[#allocation11] sm:$0xff]  ;;  %v513_v22 = vld [vmem:[#allocation11 + $0x8] sm:$0xff]  ;;  %v514_v23 = vld [vmem:[#allocation11 + $0x10] sm:$0xff] }
  0xe1   : > { %967 = vst [vmem:[#allocation2 + $0x70] sm:$0xff] %v832_v27  ;;  %v834_v40 = vadd.f32 %v810_v21, %v648_v28  ;;  %v502_v41 = vmul.f32 %v2532_v7, %v477_v24  ;;  %v627_v42 = vmul.f32 %v2534_v8, %v602_v25  ;;  %v813_v43 = vmul.f32 %v2538_v15, %v788_v26  ;;  %v664_v19 = vld [vmem:[#allocation11 + $0x100] sm:$0xff] }
  0xe2   : > { %968 = vst [vmem:[#allocation2 + $0x78] sm:$0xff] %v833_v33  ;;  %v835_v46 = vadd.f32 %v811_v29, %v649_v34  ;;  %v650_v47 = vadd.f32 %v626_v35, %v501_v30  ;;  %v503_v48 = vmul.f32 %v2532_v7, %v478_v31  ;;  %v628_v49 = vmul.f32 %v2534_v8, %v603_v32  ;;  %v850_v28 = vld [vmem:[#allocation11 + $0x200] sm:$0xff]  ;;  %v851_v29 = vld [vmem:[#allocation11 + $0x208] sm:$0xff]  ;;  %v666_v34 = vld [vmem:[#allocation11 + $0x110] sm:$0xff] }
  0xe3   : > { %969 = vst [vmem:[#allocation2 + $0x80] sm:$0xff] %v834_v40  ;;  %v651_v52 = vadd.f32 %v627_v42, %v502_v41  ;;  %v814_v53 = vmul.f32 %v2538_v15, %v789_v37  ;;  %v504_v54 = vmul.f32 %v2532_v7, %v479_v38  ;;  %v629_v55 = vmul.f32 %v2534_v8, %v604_v39  ;;  %v852_v35 = vld [vmem:[#allocation11 + $0x210] sm:$0xff]  ;;  %v667_v41 = vld [vmem:[#allocation11 + $0x118] sm:$0xff] }
  0xe4   : > { %970 = vst [vmem:[#allocation2 + $0x88] sm:$0xff] %v835_v46  ;;  %v836_v60 = vadd.f32 %v812_v36, %v650_v47  ;;  %v652_v61 = vadd.f32 %v628_v49, %v503_v48  ;;  %v815_v62 = vmul.f32 %v2538_v15, %v790_v44  ;;  %v505_v63 = vmul.f32 %v2532_v7, %v480_v45  ;;  %v515_v36 = vld [vmem:[#allocation11 + $0x18] sm:$0xff]  ;;  %v668_v48 = vld [vmem:[#allocation11 + $0x120] sm:$0xff] }
  0xe5   : > { %v837_v0 = vadd.f32 %v813_v43, %v651_v52  ;;  %v653_v1 = vadd.f32 %v629_v55, %v504_v54  ;;  %v630_v2 = vmul.f32 %v2534_v8, %v605_v50  ;;  %v816_v12 = vmul.f32 %v2538_v15, %v791_v51  ;;  %v853_v42 = vld [vmem:[#allocation11 + $0x218] sm:$0xff]  ;;  %v516_v43 = vld [vmem:[#allocation11 + $0x20] sm:$0xff]  ;;  %v517_v54 = vld [vmem:[#allocation11 + $0x28] sm:$0xff] }
  0xe6   : > { %971 = vst [vmem:[#allocation2 + $0x90] sm:$0xff] %v836_v60  ;;  %v838_v5 = vadd.f32 %v814_v53, %v652_v61  ;;  %v506_v6 = vmul.f32 %v2532_v7, %v481_v56  ;;  %v631_v9 = vmul.f32 %v2534_v8, %v606_v57  ;;  %v817_v10 = vmul.f32 %v2538_v15, %v792_v58  ;;  %v665_v15 = vld [vmem:[#allocation11 + $0x108] sm:$0xff]  ;;  %v854_v49 = vld [vmem:[#allocation11 + $0x220] sm:$0xff] }
  0xe7   : > { %972 = vst [vmem:[#allocation2 + $0x98] sm:$0xff] %v837_v0  ;;  %v839_v13 = vadd.f32 %v815_v62, %v653_v1  ;;  %v654_v14 = vadd.f32 %v630_v2, %v505_v63  ;;  %v509_v16 = vstv %s2593_s21  ;;  %v659_v17 = vstv %s2595_s27  ;;  %v669_v55 = vld [vmem:[#allocation11 + $0x128] sm:$0xff]  ;;  %v518_v62 = vld [vmem:[#allocation11 + $0x30] sm:$0xff]  ;;  %s2734_s21 = sld [smem:[#allocation6 + $0x182]] }
  0xe8   : > { %973 = vst [vmem:[#allocation2 + $0xa0] sm:$0xff] %v838_v5  ;;  %v655_v20 = vadd.f32 %v631_v9, %v506_v6  ;;  %v510_v7 = vmul.f32 %v509_v16, %v508_v3  ;;  %v660_v21 = vmul.f32 %v1593_v4, %v659_v17  ;;  %v845_v8 = vstv %s2599_s4  ;;  %v855_v56 = vld [vmem:[#allocation11 + $0x228] sm:$0xff]  ;;  %v670_v63 = vld [vmem:[#allocation11 + $0x130] sm:$0xff]  ;;  %v519_v4 = vld [vmem:[#allocation11 + $0x38] sm:$0xff] }
  0xe9   : > { %974 = vst [vmem:[#allocation2 + $0xa8] sm:$0xff] %v839_v13  ;;  %v840_v24 = vadd.f32 %v816_v12, %v654_v14  ;;  %v846_v25 = vmul.f32 %v1599_v11, %v845_v8  ;;  %v2640_v26 = vstv %s2604_s6  ;;  %v2643_v27 = vstv %s2606_s0  ;;  %v856_v3 = vld [vmem:[#allocation11 + $0x230] sm:$0xff]  ;;  %v857_v11 = vld [vmem:[#allocation11 + $0x238] sm:$0xff]  ;;  %s2942_s6 = sld [smem:[#allocation31_spill]] }
  0xea   : > { %v841_v30 = vadd.f32 %v817_v10, %v655_v20  ;;  %v661_v31 = vadd.f32 %v660_v21, %v510_v7  ;;  %v545_v32 = vmul.f32 %v2640_v26, %v512_v18  ;;  %v697_v33 = vmul.f32 %v2643_v27, %v664_v19  ;;  %v671_v10 = vld [vmem:[#allocation11 + $0x138] sm:$0xff]  ;;  %v520_v18 = vld [vmem:[#allocation11 + $0x40] sm:$0xff] }
  0xeb   : > { %975 = vst [vmem:[#allocation2 + $0xb0] sm:$0xff] %v840_v24  ;;  %v2648_v37 = vstv %s2618_s17  ;;  %v546_v38 = vmul.f32 %v2640_v26, %v513_v22  ;;  %v698_v39 = vmul.f32 %v2643_v27, %v665_v15  ;;  %v547_v40 = vmul.f32 %v2640_v26, %v514_v23  ;;  %v672_v19 = vld [vmem:[#allocation11 + $0x140] sm:$0xff]  ;;  %v521_v15 = vld [vmem:[#allocation11 + $0x48] sm:$0xff] }
  0xec   : > { %976 = vst [vmem:[#allocation2 + $0xb8] sm:$0xff] %v841_v30  ;;  %v847_v44 = vadd.f32 %v846_v25, %v661_v31  ;;  %v729_v45 = vadd.f32 %v697_v33, %v545_v32  ;;  %v883_v46 = vmul.f32 %v2648_v37, %v850_v28  ;;  %v884_v47 = vmul.f32 %v2648_v37, %v851_v29  ;;  %v858_v20 = vld [vmem:[#allocation11 + $0x240] sm:$0xff]  ;;  %v673_v23 = vld [vmem:[#allocation11 + $0x148] sm:$0xff]  ;;  %v522_v31 = vld [vmem:[#allocation11 + $0x50] sm:$0xff] }
  0xed   : > { %v730_v50 = vadd.f32 %v698_v39, %v546_v38  ;;  %v699_v51 = vmul.f32 %v2643_v27, %v666_v34  ;;  %v885_v52 = vmul.f32 %v2648_v37, %v852_v35  ;;  %v548_v53 = vmul.f32 %v2640_v26, %v515_v36  ;;  %v859_v30 = vld [vmem:[#allocation11 + $0x248] sm:$0xff]  ;;  %v674_v32 = vld [vmem:[#allocation11 + $0x150] sm:$0xff]  ;;  %v523_v39 = vld [vmem:[#allocation11 + $0x58] sm:$0xff] }
  0xee   : > { %981 = vst.msk [vmem:[#allocation3] sm:$0x3] %vm2614_vm0, %v847_v44  ;;  %v915_v57 = vadd.f32 %v883_v46, %v729_v45  ;;  %v700_v58 = vmul.f32 %v2643_v27, %v667_v41  ;;  %v886_v60 = vmul.f32 %v2648_v37, %v853_v42  ;;  %v549_v61 = vmul.f32 %v2640_v26, %v516_v43  ;;  %v860_v38 = vld [vmem:[#allocation11 + $0x250] sm:$0xff]  ;;  %v675_v44 = vld [vmem:[#allocation11 + $0x158] sm:$0xff] }
  0xef   : > { %v916_v0 = vadd.f32 %v884_v47, %v730_v50  ;;  %v731_v1 = vadd.f32 %v699_v51, %v547_v40  ;;  %v701_v2 = vmul.f32 %v2643_v27, %v668_v48  ;;  %v887_v12 = vmul.f32 %v2648_v37, %v854_v49  ;;  %v861_v45 = vld [vmem:[#allocation11 + $0x258] sm:$0xff]  ;;  %v524_v50 = vld [vmem:[#allocation11 + $0x60] sm:$0xff] }
  0xf0   : > { %982 = vst [vmem:[#allocation4] sm:$0xff] %v915_v57  ;;  %v732_v59 = vadd.f32 %v700_v58, %v548_v53  ;;  %v550_v5 = vmul.f32 %v2640_v26, %v517_v54  ;;  %v702_v6 = vmul.f32 %v2643_v27, %v669_v55  ;;  %v888_v9 = vmul.f32 %v2648_v37, %v855_v56  ;;  %v676_v51 = vld [vmem:[#allocation11 + $0x160] sm:$0xff]  ;;  %v525_v57 = vld [vmem:[#allocation11 + $0x68] sm:$0xff] }
  0xf1   : > { %983 = vst [vmem:[#allocation4 + $0x8] sm:$0xff] %v916_v0  ;;  %v917_v13 = vadd.f32 %v885_v52, %v731_v1  ;;  %v733_v14 = vadd.f32 %v701_v2, %v549_v61  ;;  %v551_v16 = vmul.f32 %v2640_v26, %v518_v62  ;;  %v703_v17 = vmul.f32 %v2643_v27, %v670_v63  ;;  %v862_v52 = vld [vmem:[#allocation11 + $0x260] sm:$0xff]  ;;  %v677_v58 = vld [vmem:[#allocation11 + $0x168] sm:$0xff]  ;;  %v526_v1 = vld [vmem:[#allocation11 + $0x70] sm:$0xff] }
  0xf2   : > { %v918_v7 = vadd.f32 %v886_v60, %v732_v59  ;;  %v734_v21 = vadd.f32 %v702_v6, %v550_v5  ;;  %v889_v8 = vmul.f32 %v2648_v37, %v856_v3  ;;  %v552_v22 = vmul.f32 %v2640_v26, %v519_v4  ;;  %v863_v0 = vld [vmem:[#allocation11 + $0x268] sm:$0xff]  ;;  %v678_v2 = vld [vmem:[#allocation11 + $0x170] sm:$0xff]  ;;  %v527_v6 = vld [vmem:[#allocation11 + $0x78] sm:$0xff] }
  0xf3   : > { %984 = vst [vmem:[#allocation4 + $0x10] sm:$0xff] %v917_v13  ;;  %v919_v24 = vadd.f32 %v887_v12, %v733_v14  ;;  %v735_v25 = vadd.f32 %v703_v17, %v551_v16  ;;  %v704_v28 = vmul.f32 %v2643_v27, %v671_v10  ;;  %v890_v29 = vmul.f32 %v2648_v37, %v857_v11  ;;  %v864_v5 = vld [vmem:[#allocation11 + $0x270] sm:$0xff]  ;;  %v679_v14 = vld [vmem:[#allocation11 + $0x178] sm:$0xff] }
  0xf4   : > { %985 = vst [vmem:[#allocation4 + $0x18] sm:$0xff] %v918_v7  ;;  %v920_v33 = vadd.f32 %v888_v9, %v734_v21  ;;  %v553_v34 = vmul.f32 %v2640_v26, %v520_v18  ;;  %v705_v35 = vmul.f32 %v2643_v27, %v672_v19  ;;  %v891_v36 = vmul.f32 %v2648_v37, %v858_v20  ;;  %v865_v16 = vld [vmem:[#allocation11 + $0x278] sm:$0xff]  ;;  %v528_v7 = vld [vmem:[#allocation11 + $0x80] sm:$0xff] }
  0xf5   : > { %986 = vst [vmem:[#allocation4 + $0x20] sm:$0xff] %v919_v24  ;;  %v921_v40 = vadd.f32 %v889_v8, %v735_v25  ;;  %v736_v41 = vadd.f32 %v704_v28, %v552_v22  ;;  %v554_v42 = vmul.f32 %v2640_v26, %v521_v15  ;;  %v706_v43 = vmul.f32 %v2643_v27, %v673_v23  ;;  %v680_v21 = vld [vmem:[#allocation11 + $0x180] sm:$0xff]  ;;  %v529_v25 = vld [vmem:[#allocation11 + $0x88] sm:$0xff] }
  0xf6   : > { %987 = vst [vmem:[#allocation4 + $0x28] sm:$0xff] %v920_v33  ;;  %v737_v46 = vadd.f32 %v705_v35, %v553_v34  ;;  %v892_v47 = vmul.f32 %v2648_v37, %v859_v30  ;;  %v555_v48 = vmul.f32 %v2640_v26, %v522_v31  ;;  %v707_v49 = vmul.f32 %v2643_v27, %v674_v32  ;;  %v866_v8 = vld [vmem:[#allocation11 + $0x280] sm:$0xff]  ;;  %v681_v28 = vld [vmem:[#allocation11 + $0x188] sm:$0xff]  ;;  %v530_v34 = vld [vmem:[#allocation11 + $0x90] sm:$0xff] }
  0xf7   : > { %988 = vst [vmem:[#allocation4 + $0x30] sm:$0xff] %v921_v40  ;;  %v922_v53 = vadd.f32 %v890_v29, %v736_v41  ;;  %v738_v54 = vadd.f32 %v706_v43, %v554_v42  ;;  %v893_v55 = vmul.f32 %v2648_v37, %v860_v38  ;;  %v556_v56 = vmul.f32 %v2640_v26, %v523_v39  ;;  %v867_v33 = vld [vmem:[#allocation11 + $0x288] sm:$0xff]  ;;  %v682_v35 = vld [vmem:[#allocation11 + $0x190] sm:$0xff]  ;;  %v531_v42 = vld [vmem:[#allocation11 + $0x98] sm:$0xff] }
  0xf8   : > { %v923_v60 = vadd.f32 %v891_v36, %v737_v46  ;;  %v739_v61 = vadd.f32 %v707_v49, %v555_v48  ;;  %v708_v62 = vmul.f32 %v2643_v27, %v675_v44  ;;  %v894_v63 = vmul.f32 %v2648_v37, %v861_v45  ;;  %v868_v41 = vld [vmem:[#allocation11 + $0x290] sm:$0xff]  ;;  %v869_v48 = vld [vmem:[#allocation11 + $0x298] sm:$0xff] }
  0xf9   : > { %989 = vst [vmem:[#allocation4 + $0x38] sm:$0xff] %v922_v53  ;;  %v924_v12 = vadd.f32 %v892_v47, %v738_v54  ;;  %v557_v3 = vmul.f32 %v2640_v26, %v524_v50  ;;  %v709_v4 = vmul.f32 %v2643_v27, %v676_v51  ;;  %v895_v59 = vmul.f32 %v2648_v37, %v862_v52  ;;  %v683_v47 = vld [vmem:[#allocation11 + $0x198] sm:$0xff]  ;;  %v532_v53 = vld [vmem:[#allocation11 + $0xa0] sm:$0xff] }
  0xfa   : > { %990 = vst [vmem:[#allocation4 + $0x40] sm:$0xff] %v923_v60  ;;  %v925_v9 = vadd.f32 %v893_v55, %v739_v61  ;;  %v740_v10 = vadd.f32 %v708_v62, %v556_v56  ;;  %v558_v11 = vmul.f32 %v2640_v26, %v525_v57  ;;  %v710_v13 = vmul.f32 %v2643_v27, %v677_v58  ;;  %v684_v54 = vld [vmem:[#allocation11 + $0x1a0] sm:$0xff]  ;;  %v533_v61 = vld [vmem:[#allocation11 + $0xa8] sm:$0xff] }
  0xfb   : > { %991 = vst [vmem:[#allocation4 + $0x48] sm:$0xff] %v924_v12  ;;  %v741_v17 = vadd.f32 %v709_v4, %v557_v3  ;;  %v896_v18 = vmul.f32 %v2648_v37, %v863_v0  ;;  %v559_v19 = vmul.f32 %v2640_v26, %v526_v1  ;;  %v711_v20 = vmul.f32 %v2643_v27, %v678_v2  ;;  %v870_v55 = vld [vmem:[#allocation11 + $0x2a0] sm:$0xff]  ;;  %v685_v62 = vld [vmem:[#allocation11 + $0x1a8] sm:$0xff]  ;;  %v534_v3 = vld [vmem:[#allocation11 + $0xb0] sm:$0xff] }
  0xfc   : > { %992 = vst [vmem:[#allocation4 + $0x50] sm:$0xff] %v925_v9  ;;  %v926_v22 = vadd.f32 %v894_v63, %v740_v10  ;;  %v742_v15 = vadd.f32 %v710_v13, %v558_v11  ;;  %v897_v23 = vmul.f32 %v2648_v37, %v864_v5  ;;  %v560_v24 = vmul.f32 %v2640_v26, %v527_v6  ;;  %v871_v12 = vld [vmem:[#allocation11 + $0x2a8] sm:$0xff]  ;;  %v686_v4 = vld [vmem:[#allocation11 + $0x1b0] sm:$0xff]  ;;  %v535_v11 = vld [vmem:[#allocation11 + $0xb8] sm:$0xff] }
  0xfd   : > { %v927_v29 = vadd.f32 %v895_v59, %v741_v17  ;;  %v743_v30 = vadd.f32 %v711_v20, %v559_v19  ;;  %v712_v31 = vmul.f32 %v2643_v27, %v679_v14  ;;  %v898_v32 = vmul.f32 %v2648_v37, %v865_v16  ;;  %v872_v10 = vld [vmem:[#allocation11 + $0x2b0] sm:$0xff]  ;;  %v873_v19 = vld [vmem:[#allocation11 + $0x2b8] sm:$0xff] }
  0xfe   : > { %993 = vst [vmem:[#allocation4 + $0x58] sm:$0xff] %v926_v22  ;;  %v928_v36 = vadd.f32 %v896_v18, %v742_v15  ;;  %v561_v38 = vmul.f32 %v2640_v26, %v528_v7  ;;  %v713_v39 = vmul.f32 %v2643_v27, %v680_v21  ;;  %v899_v40 = vmul.f32 %v2648_v37, %v866_v8  ;;  %v687_v18 = vld [vmem:[#allocation11 + $0x1b8] sm:$0xff]  ;;  %v536_v22 = vld [vmem:[#allocation11 + $0xc0] sm:$0xff] }
  0xff   : > { %994 = vst [vmem:[#allocation4 + $0x60] sm:$0xff] %v927_v29  ;;  %v929_v43 = vadd.f32 %v897_v23, %v743_v30  ;;  %v744_v44 = vadd.f32 %v712_v31, %v560_v24  ;;  %v562_v45 = vmul.f32 %v2640_v26, %v529_v25  ;;  %v714_v46 = vmul.f32 %v2643_v27, %v681_v28  ;;  %v688_v15 = vld [vmem:[#allocation11 + $0x1c0] sm:$0xff]  ;;  %v537_v30 = vld [vmem:[#allocation11 + $0xc8] sm:$0xff] }
 0x100   : > { %995 = vst [vmem:[#allocation4 + $0x68] sm:$0xff] %v928_v36  ;;  %v745_v49 = vadd.f32 %v713_v39, %v561_v38  ;;  %v900_v50 = vmul.f32 %v2648_v37, %v867_v33  ;;  %v563_v51 = vmul.f32 %v2640_v26, %v530_v34  ;;  %v715_v52 = vmul.f32 %v2643_v27, %v682_v35  ;;  %v874_v23 = vld [vmem:[#allocation11 + $0x2c0] sm:$0xff]  ;;  %v689_v31 = vld [vmem:[#allocation11 + $0x1c8] sm:$0xff]  ;;  %v538_v38 = vld [vmem:[#allocation11 + $0xd0] sm:$0xff] }
 0x101   : > { %996 = vst [vmem:[#allocation4 + $0x70] sm:$0xff] %v929_v43  ;;  %v930_v56 = vadd.f32 %v898_v32, %v744_v44  ;;  %v746_v57 = vadd.f32 %v714_v46, %v562_v45  ;;  %v901_v58 = vmul.f32 %v2648_v37, %v868_v41  ;;  %v564_v60 = vmul.f32 %v2640_v26, %v531_v42  ;;  %v875_v36 = vld [vmem:[#allocation11 + $0x2c8] sm:$0xff]  ;;  %v690_v39 = vld [vmem:[#allocation11 + $0x1d0] sm:$0xff]  ;;  %v539_v45 = vld [vmem:[#allocation11 + $0xd8] sm:$0xff] }
 0x102   : > { %v931_v63 = vadd.f32 %v899_v40, %v745_v49  ;;  %v747_v0 = vadd.f32 %v715_v52, %v563_v51  ;;  %v716_v1 = vmul.f32 %v2643_v27, %v683_v47  ;;  %v902_v2 = vmul.f32 %v2648_v37, %v869_v48  ;;  %v876_v44 = vld [vmem:[#allocation11 + $0x2d0] sm:$0xff]  ;;  %v877_v51 = vld [vmem:[#allocation11 + $0x2d8] sm:$0xff] }
 0x103   : > { %997 = vst [vmem:[#allocation4 + $0x78] sm:$0xff] %v930_v56  ;;  %v932_v59 = vadd.f32 %v900_v50, %v746_v57  ;;  %v565_v5 = vmul.f32 %v2640_v26, %v532_v53  ;;  %v717_v6 = vmul.f32 %v2643_v27, %v684_v54  ;;  %v903_v9 = vmul.f32 %v2648_v37, %v870_v55  ;;  %v691_v50 = vld [vmem:[#allocation11 + $0x1d8] sm:$0xff]  ;;  %v540_v56 = vld [vmem:[#allocation11 + $0xe0] sm:$0xff] }
 0x104   : > { %998 = vst [vmem:[#allocation4 + $0x80] sm:$0xff] %v931_v63  ;;  %v933_v13 = vadd.f32 %v901_v58, %v747_v0  ;;  %v748_v14 = vadd.f32 %v716_v1, %v564_v60  ;;  %v566_v16 = vmul.f32 %v2640_v26, %v533_v61  ;;  %v718_v17 = vmul.f32 %v2643_v27, %v685_v62  ;;  %v692_v57 = vld [vmem:[#allocation11 + $0x1e0] sm:$0xff]  ;;  %v541_v0 = vld [vmem:[#allocation11 + $0xe8] sm:$0xff] }
 0x105   : > { %999 = vst [vmem:[#allocation4 + $0x88] sm:$0xff] %v932_v59  ;;  %v749_v20 = vadd.f32 %v717_v6, %v565_v5  ;;  %v904_v7 = vmul.f32 %v2648_v37, %v871_v12  ;;  %v567_v21 = vmul.f32 %v2640_v26, %v534_v3  ;;  %v719_v8 = vmul.f32 %v2643_v27, %v686_v4  ;;  %v878_v58 = vld [vmem:[#allocation11 + $0x2e0] sm:$0xff]  ;;  %v693_v1 = vld [vmem:[#allocation11 + $0x1e8] sm:$0xff]  ;;  %v542_v5 = vld [vmem:[#allocation11 + $0xf0] sm:$0xff] }
 0x106   : > { %1000 = vst [vmem:[#allocation4 + $0x90] sm:$0xff] %v933_v13  ;;  %v934_v24 = vadd.f32 %v902_v2, %v748_v14  ;;  %v750_v25 = vadd.f32 %v718_v17, %v566_v16  ;;  %v905_v28 = vmul.f32 %v2648_v37, %v872_v10  ;;  %v568_v29 = vmul.f32 %v2640_v26, %v535_v11  ;;  %v879_v59 = vld [vmem:[#allocation11 + $0x2e8] sm:$0xff]  ;;  %v694_v6 = vld [vmem:[#allocation11 + $0x1f0] sm:$0xff]  ;;  %v543_v16 = vld [vmem:[#allocation11 + $0xf8] sm:$0xff] }
 0x107   : > { %v935_v32 = vadd.f32 %v903_v9, %v749_v20  ;;  %v751_v33 = vadd.f32 %v719_v8, %v567_v21  ;;  %v720_v34 = vmul.f32 %v2643_v27, %v687_v18  ;;  %v906_v35 = vmul.f32 %v2648_v37, %v873_v19  ;;  %v880_v14 = vld [vmem:[#allocation11 + $0x2f0] sm:$0xff]  ;;  %v881_v21 = vld [vmem:[#allocation11 + $0x2f8] sm:$0xff] }
 0x108   : > { %1001 = vst [vmem:[#allocation4 + $0x98] sm:$0xff] %v934_v24  ;;  %v936_v40 = vadd.f32 %v904_v7, %v750_v25  ;;  %v569_v41 = vmul.f32 %v2640_v26, %v536_v22  ;;  %v721_v42 = vmul.f32 %v2643_v27, %v688_v15  ;;  %v907_v43 = vmul.f32 %v2648_v37, %v874_v23  ;;  %v695_v7 = vld [vmem:[#allocation11 + $0x1f8] sm:$0xff] }
 0x109   : > { %1002 = vst [vmem:[#allocation4 + $0xa0] sm:$0xff] %v935_v32  ;;  %v937_v46 = vadd.f32 %v905_v28, %v751_v33  ;;  %v752_v47 = vadd.f32 %v720_v34, %v568_v29  ;;  %v570_v48 = vmul.f32 %v2640_v26, %v537_v30  ;;  %v722_v49 = vmul.f32 %v2643_v27, %v689_v31  ;;  %v578_v30 = vld [vmem:[%s2942_s6] sm:$0x1]  ;;  %v1596_v31 = vld [vmem:[%s2942_s6 + $0x1] sm:$0x1] }
 0x10a   : > { %1003 = vst [vmem:[#allocation4 + $0xa8] sm:$0xff] %v936_v40  ;;  %v753_v52 = vadd.f32 %v721_v42, %v569_v41  ;;  %v908_v53 = vmul.f32 %v2648_v37, %v875_v36  ;;  %v571_v54 = vmul.f32 %v2640_v26, %v538_v38  ;;  %v723_v55 = vmul.f32 %v2643_v27, %v690_v39  ;;  %v1602_v36 = vld [vmem:[%s2942_s6 + $0x2] sm:$0x1] }
 0x10b   : > { %1004 = vst [vmem:[#allocation4 + $0xb0] sm:$0xff] %v937_v46  ;;  %v938_v60 = vadd.f32 %v906_v35, %v752_v47  ;;  %v754_v61 = vadd.f32 %v722_v49, %v570_v48  ;;  %v909_v62 = vmul.f32 %v2648_v37, %v876_v44  ;;  %v572_v63 = vmul.f32 %v2640_v26, %v539_v45 }
 0x10c   : > { %v939_v2 = vadd.f32 %v907_v43, %v753_v52  ;;  %v755_v12 = vadd.f32 %v723_v55, %v571_v54  ;;  %v724_v3 = vmul.f32 %v2643_v27, %v691_v50  ;;  %v910_v4 = vmul.f32 %v2648_v37, %v877_v51 }
 0x10d   : > { %1005 = vst [vmem:[#allocation4 + $0xb8] sm:$0xff] %v938_v60  ;;  %v940_v9 = vadd.f32 %v908_v53, %v754_v61  ;;  %v573_v10 = vmul.f32 %v2640_v26, %v540_v56  ;;  %v725_v11 = vmul.f32 %v2643_v27, %v692_v57  ;;  %v911_v13 = vmul.f32 %v2648_v37, %v878_v58 }
 0x10e   : > { %1006 = vst [vmem:[#allocation4 + $0xc0] sm:$0xff] %v939_v2  ;;  %v941_v17 = vadd.f32 %v909_v62, %v755_v12  ;;  %v756_v18 = vadd.f32 %v724_v3, %v572_v63  ;;  %v574_v19 = vmul.f32 %v2640_v26, %v541_v0  ;;  %v726_v20 = vmul.f32 %v2643_v27, %v693_v1 }
 0x10f   : > { %1007 = vst [vmem:[#allocation4 + $0xc8] sm:$0xff] %v940_v9  ;;  %v757_v8 = vadd.f32 %v725_v11, %v573_v10  ;;  %v912_v22 = vmul.f32 %v2648_v37, %v879_v59  ;;  %v575_v15 = vmul.f32 %v2640_v26, %v542_v5  ;;  %v727_v23 = vmul.f32 %v2643_v27, %v694_v6 }
 0x110   : > { %1008 = vst [vmem:[#allocation4 + $0xd0] sm:$0xff] %v941_v17  ;;  %v942_v24 = vadd.f32 %v910_v4, %v756_v18  ;;  %v758_v25 = vadd.f32 %v726_v20, %v574_v19  ;;  %v913_v28 = vmul.f32 %v2648_v37, %v880_v14  ;;  %v576_v29 = vmul.f32 %v2640_v26, %v543_v16 }
 0x111   : > { %v943_v32 = vadd.f32 %v911_v13, %v757_v8  ;;  %v759_v33 = vadd.f32 %v727_v23, %v575_v15  ;;  %v728_v34 = vmul.f32 %v2643_v27, %v695_v7  ;;  %v914_v35 = vmul.f32 %v2648_v37, %v881_v21 }
 0x112   : > { %1009 = vst [vmem:[#allocation4 + $0xd8] sm:$0xff] %v942_v24  ;;  %v944_v26 = vadd.f32 %v912_v22, %v758_v25  ;;  %v579_v38 = vstv %s2727_s8  ;;  %v764_v39 = vstv %s2729_s13  ;;  %v950_v40 = vstv %s2734_s21 }
 0x113   : > { %1010 = vst [vmem:[#allocation4 + $0xe0] sm:$0xff] %v943_v32  ;;  %v945_v41 = vadd.f32 %v913_v28, %v759_v33  ;;  %v760_v42 = vadd.f32 %v728_v34, %v576_v29  ;;  %v580_v43 = vmul.f32 %v579_v38, %v578_v30  ;;  %v765_v44 = vmul.f32 %v1596_v31, %v764_v39 }
 0x114   : > { %1011 = vst [vmem:[#allocation4 + $0xe8] sm:$0xff] %v944_v26  ;;  %v951_v45 = vmul.f32 %v1602_v36, %v950_v40 }
 0x115   : > { %1012 = vst [vmem:[#allocation4 + $0xf0] sm:$0xff] %v945_v41  ;;  %v946_v27 = vadd.f32 %v914_v35, %v760_v42  ;;  %v766_v46 = vadd.f32 %v765_v44, %v580_v43 }
 0x117   : > { %1013 = vst [vmem:[#allocation4 + $0xf8] sm:$0xff] %v946_v27  ;;  %v952_v37 = vadd.f32 %v951_v45, %v766_v46 }
 0x119   : > { %1014 = vst [vmem:[#allocation5] sm:$0x1] %v952_v37 }
 0x11a PF: > { %v1018_v47 = vld [vmem:[#allocation2 + $0x8] sm:$0xff]  ;;  %v1020_v48 = vld [vmem:[#allocation2 + $0x18] sm:$0xff]  ;;  %v1017_v49 = vld [vmem:[#allocation2] sm:$0xff]  ;;  %v2210_v54 = vmov 0.0   ;;  %vm1053_vm1 = vcmask 785408   ;;  %s2943_s3 = sld [smem:[#allocation26_spill]] }
 0x11b   : > { %v1711_v50 = vpack.c.bf16 %v1020_v48, %v1018_v47  ;;  %v1019_v51 = vld [vmem:[#allocation2 + $0x10] sm:$0xff]  ;;  %v1022_v52 = vld [vmem:[#allocation2 + $0x28] sm:$0xff]  ;;  %v1024_v53 = vld [vmem:[#allocation2 + $0x38] sm:$0xff]  ;;  %1124 = vmatprep.mubr.f32.mxu0 %v2210_v54  ;;  %s2944_s8 = sld [smem:[#allocation35_spill]]  ;;  %s1396_s21 = sshll.u32 %s2529_s28, 4  ;;  %s2787_s21 = int_to_ptr.vmem [resolvable:$true] %s1396_s21 }
 0x11c   : > { %v1713_v55 = vpack.c.bf16 %v1019_v51, %v1017_v49  ;;  %v1715_v56 = vpack.c.bf16 %v1024_v53, %v1022_v52  ;;  %v1021_v57 = vld [vmem:[#allocation2 + $0x20] sm:$0xff]  ;;  %v1023_v58 = vld [vmem:[#allocation2 + $0x30] sm:$0xff]  ;;  %v1026_v60 = vld [vmem:[#allocation2 + $0x48] sm:$0xff]  ;;  %s1363_s27 = scalar_lea.sflag [#allocation18], %s2514_s1  ;;  %s2057_s4 = scalar_lea.vmem %s2787_s21, 256 }
 0x11d   : > { %1712 = vmatprep.subr.bf16.mxu0 %v1711_v50  ;;  %v1028_v61 = vld [vmem:[#allocation2 + $0x58] sm:$0xff]  ;;  %v1717_v62 = vpack.c.bf16 %v1023_v58, %v1021_v57  ;;  %v1025_v0 = vld [vmem:[#allocation2 + $0x40] sm:$0xff]  ;;  %v1027_v1 = vld [vmem:[#allocation2 + $0x50] sm:$0xff]  ;;  %p2058_p3 = scmp.ne.s32.totalorder %s2787_s21, %s2057_s4 }
 0x11e   : > { %1714 = vmatpush1.bf16.msra.mxu0 %v1713_v55  ;;  %v1719_v63 = vpack.c.bf16 %v1028_v61, %v1026_v60  ;;  %v1030_v2 = vld [vmem:[#allocation2 + $0x68] sm:$0xff]  ;;  %v1032_v12 = vld [vmem:[#allocation2 + $0x78] sm:$0xff]  ;;  %v1029_v3 = vld [vmem:[#allocation2 + $0x60] sm:$0xff]  ;;  %v1721_v59 = vpack.c.bf16 %v1027_v1, %v1025_v0 }
 0x11f   : > { %1716 = vmatprep.subr.bf16.mxu0 %v1715_v56  ;;  %v1031_v4 = vld [vmem:[#allocation2 + $0x70] sm:$0xff]  ;;  %v1034_v5 = vld [vmem:[#allocation2 + $0x88] sm:$0xff]  ;;  %v1036_v6 = vld [vmem:[#allocation2 + $0x98] sm:$0xff]  ;;  %v1723_v10 = vpack.c.bf16 %v1032_v12, %v1030_v2  ;;  %p2059_p5 = pnand %p2058_p3, %p2441_p7 }
 0x120   : > { %v1157_v9 = vld [vmem:[#allocation4 + $0x80] sm:$0xff]  ;;  %v1158_v11 = vld [vmem:[#allocation4 + $0x88] sm:$0xff]  ;;  %v1159_v18 = vld [vmem:[#allocation4 + $0x90] sm:$0xff]  ;;  %v1725_v15 = vpack.c.bf16 %v1031_v4, %v1029_v3  ;;  %v1727_v23 = vpack.c.bf16 %v1036_v6, %v1034_v5 }
 0x121   : > { %v1141_v13 = vld [vmem:[#allocation4] sm:$0xff]  ;;  %v1142_v14 = vld [vmem:[#allocation4 + $0x8] sm:$0xff]  ;;  %v1735_v16 = vpack.c.bf16 %v1158_v11, %v1157_v9  ;;  %v1160_v19 = vld [vmem:[#allocation4 + $0x98] sm:$0xff]  ;;  %p2060_p10 = pneg %p2059_p5 }
 0x122   : > { %1718 = vmatpush1.bf16.msra.mxu0 %v1717_v62  ;;  %v1737_v17 = vpack.c.bf16 %v1142_v14, %v1141_v13  ;;  %v1143_v20 = vld [vmem:[#allocation4 + $0x10] sm:$0xff]  ;;  %v1739_v7 = vpack.c.bf16 %v1160_v19, %v1159_v18  ;;  %v1144_v21 = vld [vmem:[#allocation4 + $0x18] sm:$0xff]  ;;  %v1161_v8 = vld [vmem:[#allocation4 + $0xa0] sm:$0xff] }
 0x123   : > { %1720 = vmatprep.subr.bf16.mxu0 %v1719_v63  ;;  %v1162_v22 = vld [vmem:[#allocation4 + $0xa8] sm:$0xff]  ;;  %1736 = vmatprep.subr.bf16.mxu1 %v1735_v16  ;;  %v1033_v24 = vld [vmem:[#allocation2 + $0x80] sm:$0xff]  ;;  %v1741_v29 = vpack.c.bf16 %v1144_v21, %v1143_v20  ;;  %v1040_v30 = vld [vmem:[#allocation2 + $0xb8] sm:$0xff] }
 0x124   : > { %v1035_v25 = vld [vmem:[#allocation2 + $0x90] sm:$0xff]  ;;  %v1038_v28 = vld [vmem:[#allocation2 + $0xa8] sm:$0xff]  ;;  %1738 = vmatpush3.bf16.msra.mxu1 %v1737_v17  ;;  %v1743_v31 = vpack.c.bf16 %v1162_v22, %v1161_v8  ;;  %v1164_v35 = vld [vmem:[#allocation4 + $0xb8] sm:$0xff] }
 0x125   : > { %1740 = vmatprep.subr.bf16.mxu1 %v1739_v7  ;;  %v1145_v32 = vld [vmem:[#allocation4 + $0x20] sm:$0xff]  ;;  %v1146_v33 = vld [vmem:[#allocation4 + $0x28] sm:$0xff]  ;;  %v1163_v34 = vld [vmem:[#allocation4 + $0xb0] sm:$0xff]  ;;  %v1729_v36 = vpack.c.bf16 %v1035_v25, %v1033_v24  ;;  %v1731_v26 = vpack.c.bf16 %v1040_v30, %v1038_v28  ;;  %v1043_v24 = vlaneseq }
 0x126   : > { %1722 = vmatpush1.bf16.msra.mxu0 %v1721_v59  ;;  %v1037_v38 = vld [vmem:[#allocation2 + $0xa0] sm:$0xff]  ;;  %v1039_v39 = vld [vmem:[#allocation2 + $0xb0] sm:$0xff]  ;;  %v1745_v40 = vpack.c.bf16 %v1146_v33, %v1145_v32  ;;  %v1747_v41 = vpack.c.bf16 %v1164_v35, %v1163_v34 }
 0x127   : > { %1724 = vmatprep.subr.bf16.mxu0 %v1723_v10  ;;  %v1147_v42 = vld [vmem:[#allocation4 + $0x30] sm:$0xff]  ;;  %v1148_v43 = vld [vmem:[#allocation4 + $0x38] sm:$0xff]  ;;  %v1165_v44 = vld [vmem:[#allocation4 + $0xc0] sm:$0xff]  ;;  %v1733_v27 = vpack.c.bf16 %v1039_v39, %v1037_v38  ;;  %v1044_v25 = vshrl.u32 %v1043_v24, 7 }
 0x128   : > { %1742 = vmatpush3.bf16.msra.mxu1 %v1741_v29  ;;  %v1166_v45 = vld [vmem:[#allocation4 + $0xc8] sm:$0xff]  ;;  %v1749_v46 = vpack.c.bf16 %v1148_v43, %v1147_v42  ;;  %v1149_v47 = vld [vmem:[#allocation4 + $0x40] sm:$0xff]  ;;  %v1167_v49 = vld [vmem:[#allocation4 + $0xd0] sm:$0xff] }
 0x129   : > { %1744 = vmatprep.subr.bf16.mxu1 %v1743_v31  ;;  %v1751_v37 = vpack.c.bf16 %v1166_v45, %v1165_v44  ;;  %v1150_v48 = vld [vmem:[#allocation4 + $0x48] sm:$0xff]  ;;  %v1168_v50 = vld [vmem:[#allocation4 + $0xd8] sm:$0xff]  ;;  %v1151_v55 = vld [vmem:[#allocation4 + $0x50] sm:$0xff]  ;;  %v1045_v28 = vsub.s32 0, %v1044_v25  ;;  %v1049_v30 = vsub.s32 1, %v1044_v25 }
 0x12a   : > { %1726 = vmatpush1.bf16.msra.mxu0 %v1725_v15  ;;  %v1015_v51 = vld [vmem:[%s403_s23] sm:$0xff]  ;;  %v1753_v52 = vpack.c.bf16 %v1150_v48, %v1149_v47  ;;  %v1755_v53 = vpack.c.bf16 %v1168_v50, %v1167_v49  ;;  %v1016_v60 = vld [vmem:[%s403_s23 + $0x8] sm:$0xff]  ;;  %s1609_s23 = sshll.u32 %s2943_s3, 1 }
 0x12b   : > { %1728 = vmatprep.subr.bf16.mxu0 %v1727_v23  ;;  %v1152_v56 = vld [vmem:[#allocation4 + $0x58] sm:$0xff]  ;;  %v1169_v57 = vld [vmem:[#allocation4 + $0xe0] sm:$0xff]  ;;  %v1170_v58 = vld [vmem:[#allocation4 + $0xe8] sm:$0xff]  ;;  %s2776_s30 = sadd.s32 %s2183_s12, %s1609_s23  ;;  %s2211_s12 = smov [#allocation17]  }
 0x12c   : > { %1746 = vmatpush3.bf16.msra.mxu1 %v1745_v40  ;;  %v1757_v61 = vpack.c.bf16 %v1152_v56, %v1151_v55  ;;  %v1759_v62 = vpack.c.bf16 %v1170_v58, %v1169_v57  ;;  %v1153_v63 = vld [vmem:[#allocation4 + $0x60] sm:$0xff]  ;;  %v1154_v0 = vld [vmem:[#allocation4 + $0x68] sm:$0xff]  ;;  %v1171_v2 = vld [vmem:[#allocation4 + $0xf0] sm:$0xff]  ;;  %s1618_s20 = sshll.u32 %s2776_s30, 8  ;;  %s2061_s0 = sshll.u32 %s2211_s12, 4  ;;  %s2062_s0 = int_to_ptr.vmem [resolvable:$false] %s2061_s0 }
 0x12d   : > { %1748 = vmatprep.subr.bf16.mxu1 %v1747_v41  ;;  %v1761_v1 = vpack.c.bf16 %v1154_v0, %v1153_v63  ;;  %v1172_v12 = vld [vmem:[#allocation4 + $0xf8] sm:$0xff]  ;;  %v1155_v4 = vld [vmem:[#allocation4 + $0x70] sm:$0xff]  ;;  %v1257_v5 = vld [vmem:[#allocation13] sm:$0xff]  ;;  %s2784_s13 = scalar_lea.hbm %s2944_s8, %s1618_s20  ;;  %s2063_s17 = scalar_lea.vmem %s2062_s0, 512 }
 0x12e   : > { %1730 = vmatpush1.bf16.msra.mxu0 %v1729_v36  ;;  %v1763_v3 = vpack.c.bf16 %v1172_v12, %v1171_v2  ;;  %v1156_v59 = vld [vmem:[#allocation4 + $0x78] sm:$0xff]  ;;  %v1258_v6 = vld [vmem:[#allocation13 + $0x8] sm:$0xff]  ;;  %v1261_v14 = vld [vmem:[#allocation13 + $0x20] sm:$0xff]  ;;  %p2064_p9 = scmp.lt.s32.totalorder %s2787_s21, %s2062_s0  ;;  %p2065_p2 = scmp.lt.s32.totalorder %s2063_s17, %s2057_s4 }
 0x12f   : > { %1732 = vmatprep.subr.bf16.mxu0 %v1731_v26  ;;  %v1259_v9 = vld [vmem:[#allocation13 + $0x10] sm:$0xff]  ;;  %v1767_v10 = vpack.c.bf16 %v1258_v6, %v1257_v5  ;;  %v1260_v11 = vld [vmem:[#allocation13 + $0x18] sm:$0xff]  ;;  %v1262_v16 = vld [vmem:[#allocation13 + $0x28] sm:$0xff] }
 0x130   : > { %1750 = vmatpush3.bf16.msra.mxu1 %v1749_v46  ;;  %v1771_v13 = vpack.c.bf16 %v1260_v11, %v1259_v9  ;;  %v1775_v17 = vpack.c.bf16 %v1262_v16, %v1261_v14  ;;  %v1263_v18 = vld [vmem:[#allocation13 + $0x30] sm:$0xff]  ;;  %v1264_v19 = vld [vmem:[#allocation13 + $0x38] sm:$0xff]  ;;  %v1265_v7 = vld [vmem:[#allocation13 + $0x40] sm:$0xff]  ;;  %p2066_p6 = por %p2065_p2, %p2064_p9 }
 0x131   : > { %1752 = vmatprep.subr.bf16.mxu1 %v1751_v37  ;;  %v1779_v20 = vpack.c.bf16 %v1264_v19, %v1263_v18  ;;  %v1266_v21 = vld [vmem:[#allocation13 + $0x48] sm:$0xff]  ;;  %v1267_v22 = vld [vmem:[#allocation13 + $0x50] sm:$0xff]  ;;  %v1268_v15 = vld [vmem:[#allocation13 + $0x58] sm:$0xff] }
 0x132   : > { %1734 = vmatpush1.bf16.msra.mxu0 %v1733_v27  ;;  %v1783_v8 = vpack.c.bf16 %v1266_v21, %v1265_v7  ;;  %v1787_v23 = vpack.c.bf16 %v1268_v15, %v1267_v22  ;;  %v1041_v29 = vld [vmem:[#allocation3] sm:$0x3]  ;;  %v1269_v45 = vld [vmem:[#allocation13 + $0x60] sm:$0xff]  ;;  %v1270_v27 = vld [vmem:[#allocation13 + $0x68] sm:$0xff]  ;;  %p2067_p12 = pnand %p2066_p6, %p2060_p10 }
 0x133   : > { %1768 = vmatprep.subr.bf16.mxu0 %v1767_v10  ;;  %v1046_v31 = vrot.slane %v1041_v29, %v1045_v28  ;;  %v1050_v32 = vrot.slane %v1041_v29, %v1049_v30  ;;  %v1791_v46 = vpack.c.bf16 %v1270_v27, %v1269_v45  ;;  %v1271_v37 = vld [vmem:[#allocation13 + $0x70] sm:$0xff]  ;;  %v1272_v47 = vld [vmem:[#allocation13 + $0x78] sm:$0xff] }
 0x134   : > { %1754 = vmatpush3.bf16.msra.mxu1 %v1753_v52  ;;  %v1795_v48 = vpack.c.bf16 %v1272_v47, %v1271_v37  ;;  %v1605_v50 = vld [vmem:[#allocation5] ss:$0 sm:$0xff] }
 0x135   : > { %1603 = vmatmul.mubr.msk.f32.vlgmr.msra.gmra.mrb[0].mxu0 %vm1053_vm1, %v1015_v51  ;;  %1756 = vmatprep.subr.bf16.mxu1 %v1755_v53 }
 0x136   : > { %1130 = vmatprep.mubr.f32.mxu0 %v2210_v54  ;;  %v1765_v54 = vpack.c.bf16 %v1156_v59, %v1155_v4  ;;  %1770 = vmatpush3.bf16.msra.mxu0 %v1767_v10 }
 0x137   : > { %1772 = vmatprep.subr.bf16.mxu0 %v1771_v13 }
 0x138   : > { %1758 = vmatpush3.bf16.msra.mxu1 %v1757_v61 }
 0x139   : > { %1604 = vmatmul.mubr.msk.f32.gmra.mrb[2].mxu0 %vm1053_vm1, %v1016_v60  ;;  %1760 = vmatprep.subr.bf16.mxu1 %v1759_v62 }
 0x13a   : > { %1774 = vmatpush3.bf16.msra.mxu0 %v1771_v13 }
 0x13b   : > { %1776 = vmatprep.subr.bf16.mxu0 %v1775_v17 }
 0x13c   : > { %1762 = vmatpush3.bf16.msra.mxu1 %v1761_v1 }
 0x13d   : > { %1764 = vmatprep.subr.bf16.mxu1 %v1763_v3 }
 0x13e   : > { %1778 = vmatpush3.bf16.msra.mxu0 %v1775_v17 }
 0x13f   : > { %1780 = vmatprep.subr.bf16.mxu0 %v1779_v20 }
 0x140   : > { %1766 = vmatpush3.bf16.msra.mxu1 %v1765_v54 }
 0x142   : > { %1782 = vmatpush3.bf16.msra.mxu0 %v1779_v20 }
 0x143   : > { %1784 = vmatprep.subr.bf16.mxu0 %v1783_v8 }
 0x146   : > { %1786 = vmatpush3.bf16.msra.mxu0 %v1783_v8 }
 0x147   : > { %1788 = vmatprep.subr.bf16.mxu0 %v1787_v23 }
 0x14a   : > { %1790 = vmatpush3.bf16.msra.mxu0 %v1787_v23 }
 0x14b   : > { %1792 = vmatprep.subr.bf16.mxu0 %v1791_v46 }
 0x14e   : > { %1794 = vmatpush3.bf16.msra.mxu0 %v1791_v46 }
 0x14f   : > { %1796 = vmatprep.subr.bf16.mxu0 %v1795_v48 }
 0x152   : > { %1798 = vmatpush3.bf16.msra.mxu0 %v1795_v48 }
 0x208   : > { %v1126_v33 = vpop.f32.mrb[0].mxu0 }
 0x209   : > { %v1127_v34 = vadd.f32 %v1126_v33, %v1046_v31  ;;  %v1128_v35 = vpop.f32.mrb[1].mxu0 }
 0x20a   : > { %v1129_v36 = vadd.f32 %v1128_v35, %v1050_v32 }
 0x20b   : > { %v1137_v39 = vmax.f32 %v1127_v34, 0.0 }
 0x20c   : > { %v1132_v26 = vpop.f32.mrb[2].mxu0  ;;  %v1138_v38 = vmax.f32 %v1129_v36, 0.0 }
 0x20d   : > { %v1133_v40 = vadd.f32 %v1132_v26, %v1046_v31  ;;  %v1134_v41 = vpop.f32.mrb[3].mxu0 }
 0x20e   : > { %v1135_v42 = vadd.f32 %v1134_v41, %v1050_v32  ;;  %1244 = vmatprep.mubr.f32.mxu1 %v1138_v38 }
 0x20f   : > { %1245 = vmatmul.mubr.f32.vlgmr.msra.gmra.mrb[0].mxu1 %v1137_v39  ;;  %v1139_v44 = vmax.f32 %v1133_v40, 0.0 }
 0x210   : > { %v1140_v43 = vmax.f32 %v1135_v42, 0.0 }
 0x212   : > { %1249 = vmatprep.mubr.f32.mxu1 %v1140_v43 }
 0x213   : > { %1250 = vmatmul.mubr.f32.gmra.mrb[2].mxu1 %v1139_v44 }
 0x2e2   : > { %v1652_v49 = vpop.f32.mrb[0].mxu1 }
 0x2e3   : > { %v1653_v51 = vpop.f32.mrb[1].mxu1 }
 0x2e4   : > { %v1654_v52 = vadd.f32 %v1653_v51, %v1652_v49 }
 0x2e6   : > { %v1247_v53 = vadd.f32 %v1654_v52, %v1605_v50  ;;  %v1655_v55 = vpop.f32.mrb[2].mxu1 }
 0x2e7   : > { %v1656_v56 = vpop.f32.mrb[3].mxu1 }
 0x2e8   : > { %1255 = vst [vmem:[%s2529_s28] sm:$0xff] %v1247_v53  ;;  %v1657_v57 = vadd.f32 %v1656_v56, %v1655_v55  ;;  %1708 = vmatprep.mubr.f32.mxu0 %v1247_v53 }
 0x2ea   : > { %v1252_v58 = vadd.f32 %v1657_v57, %v1605_v50 }
 0x2ec   : > { %1256 = vst [vmem:[%s2529_s28 + $0x8] sm:$0xff] %v1252_v58  ;;  %1709 = vmatmul.mubr.f32.vlgmr.msra.gmra.mrb[4].mxu0 %v1252_v58 }
 0x2ed   : > { %2070 = shalt.err (!%p2067_p12)
}
 0x2ee   : > { %s2071_s28 = scalar_lea.hbm %s2784_s13, 256  ;;  %s2075_s3 = scalar_lea.hbm %s2944_s8, 1024 }
 0x2ef   : > { %p2072_p11 = scmp.ne.s32.totalorder %s2784_s13, %s2071_s28  ;;  %p2076_p8 = scmp.lt.u32.totalorder %s2784_s13, %s2944_s8 }
 0x2f0   : > { %p2077_p1 = scmp.lt.u32.totalorder %s2075_s3, %s2071_s28  ;;  %p2079_p3 = scmp.lt.u32.totalorder %s2071_s28, %s2784_s13 }
 0x2f1   : > { %p2073_p13 = pnand %p2072_p11, %p2441_p7 }
 0x2f2   : > { %p2078_p0 = por %p2077_p1, %p2076_p8 }
 0x2f3   : > { %p2074_p4 = pneg %p2073_p13 }
 0x2f4   : > { %p2080_p5 = por %p2079_p3, %p2078_p0 }
 0x2f6   : > { %p2081_p10 = pnand %p2080_p5, %p2074_p4 }
 0x2f8   : > { %2084 = shalt.err (!%p2081_p10)
}
 0x2f9   : > { %s2212_s25 = smov 128   ;;  %s2213_s4 = smov 8  }
 0x2fa   : > { %1818 = dma.vmem_to_hbm [thread:$0]  (%p2441_p7), %s2787_s21, 256, %s2784_s13, %s1363_s27, %s2212_s25, %s2212_s25, %s2213_s4  }
 0x2fb   : > { %s2945_s17 = sld [smem:[#allocation33_spill]]  ;;  %s1378_s28 = sshll.u32 %s2526_s19, 4  ;;  %s2827_s28 = int_to_ptr.vmem [resolvable:$true] %s1378_s28 }
 0x2fc   : > { %s2946_s3 = sld [smem:[#allocation34_spill]]  ;;  %s1358_s13 = scalar_lea.sflag [#allocation8], %s2514_s1 }
 0x2fd   : > { %s2085_s21 = scalar_lea.vmem %s2827_s28, 256  ;;  %s2214_s27 = smov [#allocation16]  }
 0x2fe   : > { %p2086_p9 = scmp.ne.s32.totalorder %s2827_s28, %s2085_s21  ;;  %s2089_s30 = sshll.u32 %s2214_s27, 4  ;;  %s2090_s30 = int_to_ptr.vmem [resolvable:$false] %s2089_s30 }
 0x2ff   : > { %s2091_s5 = scalar_lea.vmem %s2090_s30, 512  ;;  %p2092_p12 = scmp.lt.s32.totalorder %s2827_s28, %s2090_s30 }
 0x300   : > { %p2087_p2 = pnand %p2086_p9, %p2441_p7  ;;  %p2093_p11 = scmp.lt.s32.totalorder %s2091_s5, %s2085_s21 }
 0x301   : > { %v1606_v60 = vld [vmem:[%s2945_s17] ss:$0 sm:$0xff] }
 0x302   : > { %s2825_s23 = scalar_lea.hbm %s2946_s3, %s1618_s20  ;;  %p2088_p6 = pneg %p2087_p2 }
 0x303   : > { %p2094_p13 = por %p2093_p11, %p2092_p12 }
 0x305   : > { %p2095_p4 = pnand %p2094_p13, %p2088_p6 }
 0x3bf   : > { %v1710_v61 = vpop.f32.mrb[4].mxu0 }
 0x3c0   : > { %v1352_v62 = vadd.f32 %v1710_v61, %v1606_v60  ;;  %v1346_v63 = vpop.f32.mrb[5].mxu0 }
 0x3c1   : > { %v1347_v0 = vadd.f32 %v1606_v60, %v1346_v63 }
 0x3c2   : > { %1356 = vst [vmem:[%s2526_s19 + $0x8] sm:$0xff] %v1352_v62 }
 0x3c3   : > { %1355 = vst [vmem:[%s2526_s19] sm:$0xff] %v1347_v0 }
 0x3c4   : > { %2098 = shalt.err (!%p2095_p4)
}
 0x3c5   : > { %s2099_s19 = scalar_lea.hbm %s2825_s23, 256  ;;  %s2103_s0 = scalar_lea.hbm %s2946_s3, 1024 }
 0x3c6   : > { %p2100_p8 = scmp.ne.s32.totalorder %s2825_s23, %s2099_s19  ;;  %p2104_p3 = scmp.lt.u32.totalorder %s2825_s23, %s2946_s3 }
 0x3c7   : > { %p2105_p5 = scmp.lt.u32.totalorder %s2103_s0, %s2099_s19  ;;  %p2107_p9 = scmp.lt.u32.totalorder %s2099_s19, %s2825_s23 }
 0x3c8   : > { %p2101_p1 = pnand %p2100_p8, %p2441_p7 }
 0x3c9   : > { %p2106_p10 = por %p2105_p5, %p2104_p3 }
 0x3ca   : > { %p2102_p0 = pneg %p2101_p1 }
 0x3cb   : > { %p2108_p2 = por %p2107_p9, %p2106_p10 }
 0x3cd   : > { %p2109_p6 = pnand %p2108_p2, %p2102_p0 }
 0x3cf   : > { %2112 = shalt.err (!%p2109_p6)
}
 0x3d0   : > { %1817 = dma.vmem_to_hbm [thread:$0]  (%p2441_p7), %s2827_s28, 256, %s2825_s23, %s1358_s13, %s2212_s25, %s2212_s25, %s2213_s4  }
 0x3d1 PF: > { %s2947_s9 = sld [smem:[#allocation25_spill]]  ;;  %s2948_s21 = sld [smem:[#allocation27_spill]] }
 0x3d2   : > { %p1854_p12 = scmp.ge.s32.totalorder %s2199_s16, 2 }
 0x3d7   : > { %s1411_s27 = sand.u32 1, %s2947_s9   ;;  %p2949_p11 = scmp.ne.s32.totalorder %s2948_s21, 0 }
 0x3d8   : > { %s1412_s30 = scalar_lea.sflag [#allocation8], %s1411_s27 }
 0x3d9   : > { %p1839_p13 = pnand %p1854_p12, %p2949_p11 }
 0x3db   : > { %2162 = dma.done.wait (!%p1839_p13), %s1412_s30, 256  }
 0x3dc   : > { %2164 = vsyncadd (!%p1839_p13), %s1412_s30, 4294967040  ;;  %s1421_s18 = scalar_lea.sflag [#allocation18], %s1411_s27 }
 0x3dd   : > { %2166 = dma.done.wait (!%p1839_p13), %s1421_s18, 256  }
 0x3de   : > { %2168 = vsyncadd (!%p1839_p13), %s1421_s18, 4294967040  ;;  %s32_s16 = sadd.s32 1, %s2199_s16   ;;  %s2950_s30 = smov %s2175_s10 }
 0x3df   : > { %p29_p4 = scmp.ge.s32.totalorder %s32_s16, 6   ;;  %s2951_s10 = smov %s2179_s11 }
 0x3e0   : > { %s2952_s11 = smov %s2464_s22  ;;  %s2953_s12 = smov %s2191_s14 }
 0x3e1   : > { %s2954_s13 = smov %s2195_s15  ;;  %s2955_s14 = smov %s2958_s26 }
 0x3e2   : > { %s2956_s15 = smov %s2962_s24  ;;  %31 = sbr.rel (!%p29_p4) target bundleno = 21 (0x15), region = 144 }
 0x3e9   :  { %1426 = vsyncpa [#allocation7], 1 }
 0x3ea   :  { %1428 = vsyncpa [#allocation7 + $0x1], 1 }
 0x3eb   :  { %1429 = vsyncpa [#allocation12], 1 }
 0x3ec   :  { %1430 = vsyncpa [#allocation15], 1 }
 0x3ed   :  { %1432 = vsyncpa [#allocation15 + $0x1], 1 }
 0x3ee   :  { %1433 = vsyncpa [#allocation8], 1 }
 0x3ef   :  { %1435 = vsyncpa [#allocation8 + $0x1], 1 }
 0x3f0   :  { %1436 = vsyncpa [#allocation18], 1 }
 0x3f1   :  { %1438 = vsyncpa [#allocation18 + $0x1], 1 }
 0x3f2   :  { %1439 = vsyncpa [#allocation9], 1 }
 0x3f3   :  { %1441 = vsyncpa [#allocation9 + $0x1], 1 }

</bundles_post_ra>
